<compile_context>
chip_gen: v5e
topology: v5e:2x2
jax: 0.10.0
libtpu: 0.0.40
codegen_flags: <defaults>
</compile_context>

<pallas_src>
import jax
import jax.numpy as jnp
from jax.experimental import pallas as pl
from jax.experimental.pallas import tpu as pltpu

Z_DIM = 100
C_DIM = 10
H1, H2, H3, OUT = 128, 256, 512, 28 * 28
BN_EPS = 0.8                      # nn.BatchNorm1d(n, 0.8): 2nd positional arg is eps
LRELU_SLOPE = 0.2


def _generator_kernel(z_ref, c_ref,
                      w1z_ref, w1c_ref, b1_ref,
                      w2_ref, b2_ref, g2_ref, be2_ref,
                      w3_ref, b3_ref, g3_ref, be3_ref,
                      w4_ref, b4_ref,
                      o_ref):
    def lrelu(h):
        return jnp.where(h > 0, h, LRELU_SLOPE * h)

    def batchnorm(h, gamma, beta):
        # Training-mode BatchNorm1d: batch mean, biased variance, eps=0.8.
        # Single-pass statistics: var = E[h^2] - E[h]^2 (safe because eps=0.8
        # dominates any cancellation error; revert to two-pass if eps shrinks).
        mean = jnp.mean(h, axis=0, keepdims=True)
        var = jnp.mean(h * h, axis=0, keepdims=True) - mean * mean
        return (h - mean) * jax.lax.rsqrt(var + BN_EPS) * gamma + beta

    def mm(a, w_ref):
        # bf16 x bf16 MXU matmul with f32 accumulation.
        return jnp.dot(a.astype(jnp.bfloat16), w_ref[...],
                       preferred_element_type=jnp.float32)

    # Linear(110 -> 128) with fused concat, + LeakyReLU
    h = mm(z_ref[...], w1z_ref) + mm(c_ref[...], w1c_ref) + b1_ref[...]
    h = lrelu(h)

    # Linear(128 -> 256) + BatchNorm1d(256, 0.8) + LeakyReLU
    h = mm(h, w2_ref) + b2_ref[...]
    h = lrelu(batchnorm(h, g2_ref[...], be2_ref[...]))

    # Linear(256 -> 512) + BatchNorm1d(512, 0.8) + LeakyReLU
    h = mm(h, w3_ref) + b3_ref[...]
    h = lrelu(batchnorm(h, g3_ref[...], be3_ref[...]))

    # Linear(512 -> 784) + Tanh  (784-wide store: masked tail vst, cheap at B=8)
    h = mm(h, w4_ref) + b4_ref[...]
    o_ref[...] = jnp.tanh(h)


def init_params(key):
    """Deterministic f32 init mirroring PyTorch defaults:
    Linear: U(-1/sqrt(fan_in), 1/sqrt(fan_in)) for weight and bias.
    BatchNorm: gamma=1, beta=0.
    Weights stored as (in_features, out_features) so layers compute x @ W."""
    dims = [(Z_DIM + C_DIM, H1), (H1, H2), (H2, H3), (H3, OUT)]
    params = {}
    for idx, (fi, fo) in enumerate(dims, start=1):
        key, kw, kb = jax.random.split(key, 3)
        bound = 1.0 / jnp.sqrt(jnp.float32(fi))
        params[f"w{idx}"] = jax.random.uniform(kw, (fi, fo), jnp.float32, -bound, bound)
        params[f"b{idx}"] = jax.random.uniform(kb, (1, fo), jnp.float32, -bound, bound)
    params["g2"] = jnp.ones((1, H2), jnp.float32)
    params["be2"] = jnp.zeros((1, H2), jnp.float32)
    params["g3"] = jnp.ones((1, H3), jnp.float32)
    params["be3"] = jnp.zeros((1, H3), jnp.float32)
    return params


def pack_params(params):
    """One-time packing for the kernel: split w1 into z/c parts and cast
    weights to bf16 (biases / BN gamma / beta stay f32). No padding."""
    bf = jnp.bfloat16
    kp = {
        "w1z": params["w1"][:Z_DIM].astype(bf),          # (100, 128)
        "w1c": params["w1"][Z_DIM:].astype(bf),          # (10, 128)
        "b1": params["b1"],
        "w2": params["w2"].astype(bf), "b2": params["b2"],
        "g2": params["g2"], "be2": params["be2"],
        "w3": params["w3"].astype(bf), "b3": params["b3"],
        "g3": params["g3"], "be3": params["be3"],
        "w4": params["w4"].astype(bf),                   # (512, 784)
        "b4": params["b4"],                              # (1, 784)
    }
    return jax.tree_util.tree_map(jax.device_put, kp)


def _cost_estimate(B):
    """Advisory cost hint for the scheduler around the custom call."""
    mm_flops = 2 * B * ((Z_DIM + C_DIM) * H1 + H1 * H2 + H2 * H3 + H3 * OUT)
    weight_bytes = 2 * (Z_DIM * H1 + C_DIM * H1 + H1 * H2 + H2 * H3 + H3 * OUT)
    small_f32_bytes = 4 * (H1 + H2 + H3 + OUT + 2 * H2 + 2 * H3)
    io_bytes = 4 * B * (Z_DIM + C_DIM + OUT)
    return pl.CostEstimate(
        flops=mm_flops,
        transcendentals=B * OUT + H2 + H3,    # tanh + BN rsqrt
        bytes_accessed=weight_bytes + small_f32_bytes + io_bytes)


@jax.jit
def generator_forward(z, c, kp):
    """z: (B, 100), c: (B, 10) -> (B, 1, 28, 28) f32 (NCHW)."""
    B = z.shape[0]
    vmem = pl.BlockSpec(memory_space=pltpu.MemorySpace.VMEM)
    args = (z.astype(jnp.float32), c.astype(jnp.float32),
            kp["w1z"], kp["w1c"], kp["b1"],
            kp["w2"], kp["b2"], kp["g2"], kp["be2"],
            kp["w3"], kp["b3"], kp["g3"], kp["be3"],
            kp["w4"], kp["b4"])

    out = pl.pallas_call(
        _generator_kernel,
        out_shape=jax.ShapeDtypeStruct((B, OUT), jnp.float32),
        in_specs=[vmem] * len(args),
        out_specs=vmem,
        cost_estimate=_cost_estimate(B),
    )(*args)

    return out.reshape(B, 1, 28, 28)


def _reference_forward_mixed(z, c, p):
    """Pure-JAX reference reproducing the kernel's mixed precision (bf16
    weights/operands, f32 accumulation, single-pass BN)."""
    bf = jnp.bfloat16

    def lrelu(h):
        return jnp.where(h > 0, h, LRELU_SLOPE * h)

    def bn(h, g, b):
        m = jnp.mean(h, axis=0, keepdims=True)
        v = jnp.mean(h * h, axis=0, keepdims=True) - m * m
        return (h - m) * jax.lax.rsqrt(v + BN_EPS) * g + b

    def mm(a, w):
        return jnp.dot(a.astype(bf), w.astype(bf), preferred_element_type=jnp.float32)

    h = lrelu(mm(z, p["w1"][:Z_DIM]) + mm(c, p["w1"][Z_DIM:]) + p["b1"])
    h = lrelu(bn(mm(h, p["w2"]) + p["b2"], p["g2"], p["be2"]))
    h = lrelu(bn(mm(h, p["w3"]) + p["b3"], p["g3"], p["be3"]))
    h = jnp.tanh(mm(h, p["w4"]) + p["b4"])
    return h.reshape(-1, 1, 28, 28)


def _reference_forward_f32(z, c, p):
    """Full-f32 reference (matches the PyTorch module's arithmetic)."""
    x = jnp.concatenate([z, c], axis=1).astype(jnp.float32)

    def lrelu(h):
        return jnp.where(h > 0, h, LRELU_SLOPE * h)

    def bn(h, g, b):
        m = jnp.mean(h, axis=0, keepdims=True)
        v = jnp.mean((h - m) ** 2, axis=0, keepdims=True)
        return (h - m) / jnp.sqrt(v + BN_EPS) * g + b

    h = lrelu(x @ p["w1"] + p["b1"])
    h = lrelu(bn(h @ p["w2"] + p["b2"], p["g2"], p["be2"]))
    h = lrelu(bn(h @ p["w3"] + p["b3"], p["g3"], p["be3"]))
    h = jnp.tanh(h @ p["w4"] + p["b4"])
    return h.reshape(-1, 1, 28, 28)


if __name__ == "__main__":
    key = jax.random.PRNGKey(0)
    key, kz, kc, kp = jax.random.split(key, 4)

    B = 8
    z = jax.random.normal(kz, (B, Z_DIM), jnp.float32)
    # one-hot class conditioning vector, like a cGAN label
    labels = jax.random.randint(kc, (B,), 0, C_DIM)
    c = jax.nn.one_hot(labels, C_DIM, dtype=jnp.float32)

    params = init_params(kp)
    kernel_params = pack_params(params)

    out = generator_forward(z, c, kernel_params)
    out = jax.block_until_ready(out)
    assert out.shape == (B, 1, 28, 28), out.shape

    ref_mixed = _reference_forward_mixed(z, c, params)
    ref_f32 = _reference_forward_f32(z, c, params)
    assert jnp.allclose(out, ref_mixed, atol=1e-2, rtol=1e-2), \
        "mismatch vs mixed-precision JAX reference"
    assert jnp.allclose(out, ref_f32, atol=5e-2, rtol=5e-2), \
        "mismatch vs f32 JAX reference"

    print("KERNEL_OK")
</pallas_src>

<mosaic_0001>
module attributes {stable_mosaic.version = 11 : i64} {
  func.func @_generator_kernel(%arg0: memref<8x100xf32, #tpu.memory_space<vmem>>, %arg1: memref<8x10xf32, #tpu.memory_space<vmem>>, %arg2: memref<100x128xbf16, #tpu.memory_space<vmem>>, %arg3: memref<10x128xbf16, #tpu.memory_space<vmem>>, %arg4: memref<1x128xf32, #tpu.memory_space<vmem>>, %arg5: memref<128x256xbf16, #tpu.memory_space<vmem>>, %arg6: memref<1x256xf32, #tpu.memory_space<vmem>>, %arg7: memref<1x256xf32, #tpu.memory_space<vmem>>, %arg8: memref<1x256xf32, #tpu.memory_space<vmem>>, %arg9: memref<256x512xbf16, #tpu.memory_space<vmem>>, %arg10: memref<1x512xf32, #tpu.memory_space<vmem>>, %arg11: memref<1x512xf32, #tpu.memory_space<vmem>>, %arg12: memref<1x512xf32, #tpu.memory_space<vmem>>, %arg13: memref<512x784xbf16, #tpu.memory_space<vmem>>, %arg14: memref<1x784xf32, #tpu.memory_space<vmem>>, %arg15: memref<8x784xf32, #tpu.memory_space<vmem>>) attributes {dimension_semantics = [], scalar_prefetch = 0 : i64, scratch_operands = 0 : i64, tpu.core_type = #tpu.core_type<tc>} {
    %c0 = arith.constant 0 : index
    %c0_0 = arith.constant 0 : index
    %0 = vector.load %arg0[%c0, %c0_0] : memref<8x100xf32, #tpu.memory_space<vmem>>, vector<8x100xf32>
    %1 = arith.truncf %0 : vector<8x100xf32> to vector<8x100xbf16>
    %c0_1 = arith.constant 0 : index
    %c0_2 = arith.constant 0 : index
    %2 = vector.load %arg2[%c0_1, %c0_2] : memref<100x128xbf16, #tpu.memory_space<vmem>>, vector<100x128xbf16>
    %cst = arith.constant dense<0.000000e+00> : vector<8x128xf32>
    %3 = tpu.matmul %1, %2, %cst {dimension_numbers = #tpu.dot_dimension_numbers<[1], [0], [0], [1], [0, 0, 1, 1], [], []>} : vector<8x100xbf16>, vector<100x128xbf16>, vector<8x128xf32> -> vector<8x128xf32>
    %c0_3 = arith.constant 0 : index
    %c0_4 = arith.constant 0 : index
    %4 = vector.load %arg1[%c0_3, %c0_4] : memref<8x10xf32, #tpu.memory_space<vmem>>, vector<8x10xf32>
    %5 = arith.truncf %4 : vector<8x10xf32> to vector<8x10xbf16>
    %c0_5 = arith.constant 0 : index
    %c0_6 = arith.constant 0 : index
    %6 = vector.load %arg3[%c0_5, %c0_6] : memref<10x128xbf16, #tpu.memory_space<vmem>>, vector<10x128xbf16>
    %cst_7 = arith.constant dense<0.000000e+00> : vector<8x128xf32>
    %7 = tpu.matmul %5, %6, %cst_7 {dimension_numbers = #tpu.dot_dimension_numbers<[1], [0], [0], [1], [0, 0, 1, 1], [], []>} : vector<8x10xbf16>, vector<10x128xbf16>, vector<8x128xf32> -> vector<8x128xf32>
    %8 = arith.addf %3, %7 : vector<8x128xf32>
    %c0_8 = arith.constant 0 : index
    %c0_9 = arith.constant 0 : index
    %9 = vector.load %arg4[%c0_8, %c0_9] : memref<1x128xf32, #tpu.memory_space<vmem>>, vector<1x128xf32>
    %10 = vector.broadcast %9 : vector<1x128xf32> to vector<8x128xf32>
    %11 = arith.addf %8, %10 : vector<8x128xf32>
    %cst_10 = arith.constant 0.000000e+00 : f32
    %12 = vector.broadcast %cst_10 : f32 to vector<8x128xf32>
    %13 = arith.cmpf ogt, %11, %12 : vector<8x128xf32>
    %cst_11 = arith.constant 2.000000e-01 : f32
    %14 = vector.broadcast %cst_11 : f32 to vector<8x128xf32>
    %15 = arith.mulf %14, %11 : vector<8x128xf32>
    %16 = arith.select %13, %11, %15 : vector<8x128xi1>, vector<8x128xf32>
    %17 = arith.truncf %16 : vector<8x128xf32> to vector<8x128xbf16>
    %c0_12 = arith.constant 0 : index
    %c0_13 = arith.constant 0 : index
    %18 = vector.load %arg5[%c0_12, %c0_13] : memref<128x256xbf16, #tpu.memory_space<vmem>>, vector<128x256xbf16>
    %cst_14 = arith.constant dense<0.000000e+00> : vector<8x256xf32>
    %19 = tpu.matmul %17, %18, %cst_14 {dimension_numbers = #tpu.dot_dimension_numbers<[1], [0], [0], [1], [0, 0, 1, 1], [], []>} : vector<8x128xbf16>, vector<128x256xbf16>, vector<8x256xf32> -> vector<8x256xf32>
    %c0_15 = arith.constant 0 : index
    %c0_16 = arith.constant 0 : index
    %20 = vector.load %arg6[%c0_15, %c0_16] : memref<1x256xf32, #tpu.memory_space<vmem>>, vector<1x256xf32>
    %21 = vector.broadcast %20 : vector<1x256xf32> to vector<8x256xf32>
    %22 = arith.addf %19, %21 : vector<8x256xf32>
    %c0_17 = arith.constant 0 : index
    %c0_18 = arith.constant 0 : index
    %23 = vector.load %arg7[%c0_17, %c0_18] : memref<1x256xf32, #tpu.memory_space<vmem>>, vector<1x256xf32>
    %c0_19 = arith.constant 0 : index
    %c0_20 = arith.constant 0 : index
    %24 = vector.load %arg8[%c0_19, %c0_20] : memref<1x256xf32, #tpu.memory_space<vmem>>, vector<1x256xf32>
    %cst_21 = arith.constant dense<0.000000e+00> : vector<256xf32>
    %25 = vector.multi_reduction <add>, %22, %cst_21 [0] : vector<8x256xf32> to vector<256xf32>
    %26 = vector.shape_cast %25 : vector<256xf32> to vector<1x256xf32>
    %cst_22 = arith.constant 8.000000e+00 : f32
    %27 = vector.broadcast %cst_22 : f32 to vector<1x256xf32>
    %28 = arith.divf %26, %27 : vector<1x256xf32>
    %29 = arith.mulf %22, %22 : vector<8x256xf32>
    %cst_23 = arith.constant dense<0.000000e+00> : vector<256xf32>
    %30 = vector.multi_reduction <add>, %29, %cst_23 [0] : vector<8x256xf32> to vector<256xf32>
    %31 = vector.shape_cast %30 : vector<256xf32> to vector<1x256xf32>
    %cst_24 = arith.constant 8.000000e+00 : f32
    %32 = vector.broadcast %cst_24 : f32 to vector<1x256xf32>
    %33 = arith.divf %31, %32 : vector<1x256xf32>
    %34 = arith.mulf %28, %28 : vector<1x256xf32>
    %35 = arith.subf %33, %34 : vector<1x256xf32>
    %36 = vector.broadcast %28 : vector<1x256xf32> to vector<8x256xf32>
    %37 = arith.subf %22, %36 : vector<8x256xf32>
    %cst_25 = arith.constant 8.000000e-01 : f32
    %38 = vector.broadcast %cst_25 : f32 to vector<1x256xf32>
    %39 = arith.addf %35, %38 : vector<1x256xf32>
    %40 = math.rsqrt %39 : vector<1x256xf32>
    %41 = vector.broadcast %40 : vector<1x256xf32> to vector<8x256xf32>
    %42 = arith.mulf %37, %41 : vector<8x256xf32>
    %43 = vector.broadcast %23 : vector<1x256xf32> to vector<8x256xf32>
    %44 = arith.mulf %42, %43 : vector<8x256xf32>
    %45 = vector.broadcast %24 : vector<1x256xf32> to vector<8x256xf32>
    %46 = arith.addf %44, %45 : vector<8x256xf32>
    %cst_26 = arith.constant 0.000000e+00 : f32
    %47 = vector.broadcast %cst_26 : f32 to vector<8x256xf32>
    %48 = arith.cmpf ogt, %46, %47 : vector<8x256xf32>
    %cst_27 = arith.constant 2.000000e-01 : f32
    %49 = vector.broadcast %cst_27 : f32 to vector<8x256xf32>
    %50 = arith.mulf %49, %46 : vector<8x256xf32>
    %51 = arith.select %48, %46, %50 : vector<8x256xi1>, vector<8x256xf32>
    %52 = arith.truncf %51 : vector<8x256xf32> to vector<8x256xbf16>
    %c0_28 = arith.constant 0 : index
    %c0_29 = arith.constant 0 : index
    %53 = vector.load %arg9[%c0_28, %c0_29] : memref<256x512xbf16, #tpu.memory_space<vmem>>, vector<256x512xbf16>
    %cst_30 = arith.constant dense<0.000000e+00> : vector<8x512xf32>
    %54 = tpu.matmul %52, %53, %cst_30 {dimension_numbers = #tpu.dot_dimension_numbers<[1], [0], [0], [1], [0, 0, 1, 1], [], []>} : vector<8x256xbf16>, vector<256x512xbf16>, vector<8x512xf32> -> vector<8x512xf32>
    %c0_31 = arith.constant 0 : index
    %c0_32 = arith.constant 0 : index
    %55 = vector.load %arg10[%c0_31, %c0_32] : memref<1x512xf32, #tpu.memory_space<vmem>>, vector<1x512xf32>
    %56 = vector.broadcast %55 : vector<1x512xf32> to vector<8x512xf32>
    %57 = arith.addf %54, %56 : vector<8x512xf32>
    %c0_33 = arith.constant 0 : index
    %c0_34 = arith.constant 0 : index
    %58 = vector.load %arg11[%c0_33, %c0_34] : memref<1x512xf32, #tpu.memory_space<vmem>>, vector<1x512xf32>
    %c0_35 = arith.constant 0 : index
    %c0_36 = arith.constant 0 : index
    %59 = vector.load %arg12[%c0_35, %c0_36] : memref<1x512xf32, #tpu.memory_space<vmem>>, vector<1x512xf32>
    %cst_37 = arith.constant dense<0.000000e+00> : vector<512xf32>
    %60 = vector.multi_reduction <add>, %57, %cst_37 [0] : vector<8x512xf32> to vector<512xf32>
    %61 = vector.shape_cast %60 : vector<512xf32> to vector<1x512xf32>
    %cst_38 = arith.constant 8.000000e+00 : f32
    %62 = vector.broadcast %cst_38 : f32 to vector<1x512xf32>
    %63 = arith.divf %61, %62 : vector<1x512xf32>
    %64 = arith.mulf %57, %57 : vector<8x512xf32>
    %cst_39 = arith.constant dense<0.000000e+00> : vector<512xf32>
    %65 = vector.multi_reduction <add>, %64, %cst_39 [0] : vector<8x512xf32> to vector<512xf32>
    %66 = vector.shape_cast %65 : vector<512xf32> to vector<1x512xf32>
    %cst_40 = arith.constant 8.000000e+00 : f32
    %67 = vector.broadcast %cst_40 : f32 to vector<1x512xf32>
    %68 = arith.divf %66, %67 : vector<1x512xf32>
    %69 = arith.mulf %63, %63 : vector<1x512xf32>
    %70 = arith.subf %68, %69 : vector<1x512xf32>
    %71 = vector.broadcast %63 : vector<1x512xf32> to vector<8x512xf32>
    %72 = arith.subf %57, %71 : vector<8x512xf32>
    %cst_41 = arith.constant 8.000000e-01 : f32
    %73 = vector.broadcast %cst_41 : f32 to vector<1x512xf32>
    %74 = arith.addf %70, %73 : vector<1x512xf32>
    %75 = math.rsqrt %74 : vector<1x512xf32>
    %76 = vector.broadcast %75 : vector<1x512xf32> to vector<8x512xf32>
    %77 = arith.mulf %72, %76 : vector<8x512xf32>
    %78 = vector.broadcast %58 : vector<1x512xf32> to vector<8x512xf32>
    %79 = arith.mulf %77, %78 : vector<8x512xf32>
    %80 = vector.broadcast %59 : vector<1x512xf32> to vector<8x512xf32>
    %81 = arith.addf %79, %80 : vector<8x512xf32>
    %cst_42 = arith.constant 0.000000e+00 : f32
    %82 = vector.broadcast %cst_42 : f32 to vector<8x512xf32>
    %83 = arith.cmpf ogt, %81, %82 : vector<8x512xf32>
    %cst_43 = arith.constant 2.000000e-01 : f32
    %84 = vector.broadcast %cst_43 : f32 to vector<8x512xf32>
    %85 = arith.mulf %84, %81 : vector<8x512xf32>
    %86 = arith.select %83, %81, %85 : vector<8x512xi1>, vector<8x512xf32>
    %87 = arith.truncf %86 : vector<8x512xf32> to vector<8x512xbf16>
    %c0_44 = arith.constant 0 : index
    %c0_45 = arith.constant 0 : index
    %88 = vector.load %arg13[%c0_44, %c0_45] : memref<512x784xbf16, #tpu.memory_space<vmem>>, vector<512x784xbf16>
    %cst_46 = arith.constant dense<0.000000e+00> : vector<8x784xf32>
    %89 = tpu.matmul %87, %88, %cst_46 {dimension_numbers = #tpu.dot_dimension_numbers<[1], [0], [0], [1], [0, 0, 1, 1], [], []>} : vector<8x512xbf16>, vector<512x784xbf16>, vector<8x784xf32> -> vector<8x784xf32>
    %c0_47 = arith.constant 0 : index
    %c0_48 = arith.constant 0 : index
    %90 = vector.load %arg14[%c0_47, %c0_48] : memref<1x784xf32, #tpu.memory_space<vmem>>, vector<1x784xf32>
    %91 = vector.broadcast %90 : vector<1x784xf32> to vector<8x784xf32>
    %92 = arith.addf %89, %91 : vector<8x784xf32>
    %93 = math.tanh %92 : vector<8x784xf32>
    %c0_49 = arith.constant 0 : index
    %c0_50 = arith.constant 0 : index
    %94 = vector.load %arg15[%c0_49, %c0_50] : memref<8x784xf32, #tpu.memory_space<vmem>>, vector<8x784xf32>
    tpu.vector_store %arg15[%c0_49, %c0_50], %93 {strides = array<i32>} : memref<8x784xf32, #tpu.memory_space<vmem>>, vector<8x784xf32>,
    return
  }
}

</mosaic_0001>

<bundles_post_ra>
// kernel: generator_forward.1
= control target key start
LH: loop header
LB: loop body
LE: loop exit
PB: predicated region body
PF: predicated region fallthrough
CT: control target
= control target key end

     0   :  { %vm79_vm0 = vcmask 1044480   ;;  %vm139_vm1 = vcmask 1041408   ;;  %vm75_vm2 = vcmask 80896   ;;  %vm135_vm3 = vcmask 818176   ;;  %s6630_s2 = inlined_call_operand.vmem [shape: bf16[100,128], index: 2, kind: input, shape index: {}]   ;;  %s6631_s3 = inlined_call_operand.vmem [shape: bf16[10,128], index: 3, kind: input, shape index: {}]   ;;  %s6632_s1 = inlined_call_operand.vmem [shape: f32[8,10], index: 1, kind: input, shape index: {}]   ;;  %s6633_s5 = inlined_call_operand.vmem [shape: bf16[128,256], index: 5, kind: input, shape index: {}]   ;;  %s6634_s4 = inlined_call_operand.vmem [shape: f32[1,128], index: 4, kind: input, shape index: {}]   ;;  %s6635_s0 = inlined_call_operand.vmem [shape: f32[8,100], index: 0, kind: input, shape index: {}]   ;;  %s6636_s9 = inlined_call_operand.vmem [shape: bf16[256,512], index: 9, kind: input, shape index: {}]   ;;  %s6637_s6 = inlined_call_operand.vmem [shape: f32[1,256], index: 6, kind: input, shape index: {}]   ;;  %s6638_s7 = inlined_call_operand.vmem [shape: f32[1,256], index: 7, kind: input, shape index: {}]   ;;  %s6639_s8 = inlined_call_operand.vmem [shape: f32[1,256], index: 8, kind: input, shape index: {}]   ;;  %s6640_s13 = inlined_call_operand.vmem [shape: bf16[512,784], index: 13, kind: input, shape index: {}]   ;;  %s6641_s10 = inlined_call_operand.vmem [shape: f32[1,512], index: 10, kind: input, shape index: {}]   ;;  %s6642_s11 = inlined_call_operand.vmem [shape: f32[1,512], index: 11, kind: input, shape index: {}]   ;;  %s6643_s12 = inlined_call_operand.vmem [shape: f32[1,512], index: 12, kind: input, shape index: {}]   ;;  %s6644_s14 = inlined_call_operand.vmem [shape: f32[1,784], index: 14, kind: input, shape index: {}]   ;;  %s6645_s15 = inlined_call_operand.vmem [shape: f32[8,784], index: 15, kind: output, shape index: {}]  }
   0x1   :  { %v65_v0 = vld [vmem:[%s6630_s2 + $0x30] sm:$0x3]  ;;  %v2855_v2 = vld [vmem:[%s6631_s3] sm:$0xf]  ;;  %v4105_v3 = vld [vmem:[%s6631_s3] sm:$0x10] }
   0x2   :  { %v121_v1 = vunpack.c.l.b16 %v65_v0  ;;  %v2856_v4 = vor.u32 %v4105_v3, %v2855_v2  ;;  %v66_v5 = vld [vmem:[%s6632_s1] sm:$0xff]  ;;  %v2941_v7 = vld [vmem:[%s6633_s5 + $0x70] sm:$0xf]  ;;  %v4121_v10 = vld [vmem:[%s6633_s5 + $0x74] sm:$0xf0] }
   0x3   :  { %v67_v9 = vpack.c.bf16 %v66_v5, %v66_v5  ;;  %v4120_v11 = vld [vmem:[%s6633_s5 + $0x74] sm:$0xf]  ;;  %v4104_v13 = vld [vmem:[%s6630_s2 + $0x28] sm:$0xff]  ;;  %v2942_v14 = vor.u32 %v4121_v10, %v2941_v7  ;;  %v2943_v15 = vld [vmem:[%s6633_s5 + $0x78] sm:$0xf0] }
   0x4   :  { %v128_v6 = vpack.c.b16 %v121_v1, %v121_v1  ;;  %v81_v8 = vsel %vm79_vm0, %v2856_v4, 0  ;;  %v2933_v16 = vld [vmem:[%s6633_s5 + $0x60] sm:$0xf]  ;;  %v2946_v17 = vor.u32 %v4120_v11, %v2943_v15  ;;  %v4119_v18 = vld [vmem:[%s6633_s5 + $0x64] sm:$0xf0]  ;;  %v4102_v34 = vld [vmem:[%s6630_s2 + $0x18] sm:$0xff] }
   0x5   :  { %90 = vmatpush.bf16.msra.mxu0 %v81_v8  ;;  %v4118_v19 = vld [vmem:[%s6633_s5 + $0x64] sm:$0xf]  ;;  %v2935_v20 = vld [vmem:[%s6633_s5 + $0x68] sm:$0xf0]  ;;  %267 = vmatpush.bf16.msra.mxu2 %v2942_v14  ;;  %v2934_v21 = vor.u32 %v4119_v18, %v2933_v16  ;;  %v2925_v23 = vld [vmem:[%s6633_s5 + $0x50] sm:$0xf] }
   0x6   :  { %v141_v12 = vsel %vm139_vm1, %v128_v6, 0  ;;  %280 = vmatpush.bf16.msra.mxu3 %v2946_v17  ;;  %v2938_v22 = vor.u32 %v4118_v19, %v2935_v20  ;;  %v4117_v24 = vld [vmem:[%s6633_s5 + $0x54] sm:$0xf0]  ;;  %v4116_v25 = vld [vmem:[%s6633_s5 + $0x54] sm:$0xf]  ;;  %v4103_v27 = vld [vmem:[%s6630_s2 + $0x20] sm:$0xff] }
   0x7   :  { %144 = vmatpush.bf16.msra.mxu1 %v141_v12  ;;  %v2927_v26 = vld [vmem:[%s6633_s5 + $0x58] sm:$0xf0]  ;;  %v2926_v28 = vor.u32 %v4117_v24, %v2925_v23  ;;  %v2917_v30 = vld [vmem:[%s6633_s5 + $0x40] sm:$0xf]  ;;  %v4115_v31 = vld [vmem:[%s6633_s5 + $0x44] sm:$0xf0] }
   0x8   :  { %2857 = vmatmul.msk.bf16.vlgmr.msra.gmra.mxu0 %vm75_vm2, %v67_v9  ;;  %v2930_v29 = vor.u32 %v4116_v25, %v2927_v26  ;;  %v4114_v32 = vld [vmem:[%s6633_s5 + $0x44] sm:$0xf]  ;;  %v2919_v33 = vld [vmem:[%s6633_s5 + $0x48] sm:$0xf0]  ;;  %v2918_v35 = vor.u32 %v4115_v31, %v2917_v30  ;;  %v4101_v37 = vld [vmem:[%s6630_s2 + $0x10] sm:$0xff] }
   0x9   :  { %268 = vmatpush.bf16.msra.mxu2 %v2934_v21  ;;  %v2922_v36 = vor.u32 %v4114_v32, %v2919_v33  ;;  %v4100_v38 = vld [vmem:[%s6630_s2 + $0x8] sm:$0xff]  ;;  %v4099_v39 = vld [vmem:[%s6630_s2] sm:$0xff]  ;;  %v2909_v42 = vld [vmem:[%s6633_s5 + $0x30] sm:$0xf] }
   0xa   :  { %281 = vmatpush.bf16.msra.mxu3 %v2938_v22  ;;  %v51_v40 = vld [vmem:[%s6635_s0] sm:$0xff]  ;;  %v4113_v43 = vld [vmem:[%s6633_s5 + $0x34] sm:$0xf0]  ;;  %v4112_v44 = vld [vmem:[%s6633_s5 + $0x34] sm:$0xf] }
   0xb   :  { %145 = vmatpush.bf16.msra.mxu1 %v4104_v13  ;;  %v52_v41 = vpack.c.bf16 %v51_v40, %v51_v40  ;;  %v2910_v45 = vor.u32 %v4113_v43, %v2909_v42  ;;  %v2911_v46 = vld [vmem:[%s6633_s5 + $0x38] sm:$0xf0]  ;;  %v2901_v47 = vld [vmem:[%s6633_s5 + $0x20] sm:$0xf]  ;;  %v4111_v48 = vld [vmem:[%s6633_s5 + $0x24] sm:$0xf0] }
   0xc   :  { %v2914_v49 = vor.u32 %v4112_v44, %v2911_v46  ;;  %v4110_v50 = vld [vmem:[%s6633_s5 + $0x24] sm:$0xf]  ;;  %v2903_v51 = vld [vmem:[%s6633_s5 + $0x28] sm:$0xf0]  ;;  %v2902_v52 = vor.u32 %v4111_v48, %v2901_v47  ;;  %v2893_v54 = vld [vmem:[%s6633_s5 + $0x10] sm:$0xf] }
   0xd   :  { %269 = vmatpush.bf16.msra.mxu2 %v2926_v28  ;;  %v2906_v53 = vor.u32 %v4110_v50, %v2903_v51  ;;  %v4109_v55 = vld [vmem:[%s6633_s5 + $0x14] sm:$0xf0]  ;;  %v4108_v56 = vld [vmem:[%s6633_s5 + $0x14] sm:$0xf]  ;;  %v2895_v58 = vld [vmem:[%s6633_s5 + $0x18] sm:$0xf0] }
   0xe   :  { %282 = vmatpush.bf16.msra.mxu3 %v2930_v29  ;;  %v2894_v57 = vor.u32 %v4109_v55, %v2893_v54  ;;  %v2898_v59 = vor.u32 %v4108_v56, %v2895_v58  ;;  %v2885_v60 = vld [vmem:[%s6633_s5] sm:$0xf]  ;;  %v4107_v61 = vld [vmem:[%s6633_s5 + $0x4] sm:$0xf0]  ;;  %v4106_v62 = vld [vmem:[%s6633_s5 + $0x4] sm:$0xf] }
   0xf   :  { %146 = vmatpush.bf16.msra.mxu1 %v4103_v27  ;;  %v2886_v63 = vor.u32 %v4107_v61, %v2885_v60  ;;  %v2887_v0 = vld [vmem:[%s6633_s5 + $0x8] sm:$0xf0]  ;;  %v4411_v4 = vld [vmem:[%s6634_s4] ss:$0 sm:$0xff]  ;;  %v4152_v13 = vld [vmem:[%s6636_s9 + $0xec] sm:$0xf0] }
  0x10   :  { %v2890_v1 = vor.u32 %v4106_v62, %v2887_v0  ;;  %v3061_v12 = vld [vmem:[%s6636_s9 + $0xe0] sm:$0xf]  ;;  %v4184_v16 = vld [vmem:[%s6636_s9 + $0x1ec] sm:$0xf0]  ;;  %v4150_v17 = vld [vmem:[%s6636_s9 + $0xe4] sm:$0xf] }
  0x11   :  { %270 = vmatpush.bf16.msra.mxu2 %v2918_v35  ;;  %v3062_v14 = vor.u32 %v4152_v13, %v3061_v12  ;;  %v3189_v15 = vld [vmem:[%s6636_s9 + $0x1e0] sm:$0xf]  ;;  %v3063_v19 = vld [vmem:[%s6636_s9 + $0xf0] sm:$0xf0]  ;;  %v4182_v20 = vld [vmem:[%s6636_s9 + $0x1e4] sm:$0xf] }
  0x12   :  { %283 = vmatpush.bf16.msra.mxu3 %v2922_v36  ;;  %v3190_v18 = vor.u32 %v4184_v16, %v3189_v15  ;;  %v3066_v21 = vor.u32 %v4150_v17, %v3063_v19  ;;  %v3191_v22 = vld [vmem:[%s6636_s9 + $0x1f0] sm:$0xf0]  ;;  %v3045_v24 = vld [vmem:[%s6636_s9 + $0xc0] sm:$0xf]  ;;  %v4148_v25 = vld [vmem:[%s6636_s9 + $0xcc] sm:$0xf0] }
  0x13   :  { %147 = vmatpush.bf16.msra.mxu1 %v4102_v34  ;;  %778 = vmatpush.bf16.msrb.mxu0 %v3062_v14  ;;  %v3194_v23 = vor.u32 %v4182_v20, %v3191_v22  ;;  %v3173_v26 = vld [vmem:[%s6636_s9 + $0x1c0] sm:$0xf]  ;;  %v3046_v27 = vor.u32 %v4148_v25, %v3045_v24  ;;  %v4180_v28 = vld [vmem:[%s6636_s9 + $0x1cc] sm:$0xf0]  ;;  %v4146_v29 = vld [vmem:[%s6636_s9 + $0xc4] sm:$0xf] }
  0x14   :  { %v3047_v30 = vld [vmem:[%s6636_s9 + $0xd0] sm:$0xf0]  ;;  %v3174_v31 = vor.u32 %v4180_v28, %v3173_v26  ;;  %v4178_v33 = vld [vmem:[%s6636_s9 + $0x1c4] sm:$0xf]  ;;  %v3029_v36 = vld [vmem:[%s6636_s9 + $0xa0] sm:$0xf] }
  0x15   :  { %271 = vmatpush.bf16.msra.mxu2 %v2910_v45  ;;  %v3050_v32 = vor.u32 %v4146_v29, %v3047_v30  ;;  %v3175_v34 = vld [vmem:[%s6636_s9 + $0x1d0] sm:$0xf0]  ;;  %v4176_v40 = vld [vmem:[%s6636_s9 + $0x1ac] sm:$0xf0]  ;;  %v4174_v45 = vld [vmem:[%s6636_s9 + $0x1a4] sm:$0xf] }
  0x16   :  { %284 = vmatpush.bf16.msra.mxu3 %v2914_v49  ;;  %v3178_v35 = vor.u32 %v4178_v33, %v3175_v34  ;;  %v3031_v42 = vld [vmem:[%s6636_s9 + $0xb0] sm:$0xf0]  ;;  %v3013_v48 = vld [vmem:[%s6636_s9 + $0x80] sm:$0xf]  ;;  %v4140_v49 = vld [vmem:[%s6636_s9 + $0x8c] sm:$0xf0] }
  0x17   :  { %148 = vmatpush.bf16.msra.mxu1 %v4101_v37  ;;  %779 = vmatpush.bf16.msrb.mxu0 %v3046_v27  ;;  %v4144_v37 = vld [vmem:[%s6636_s9 + $0xac] sm:$0xf0]  ;;  %v3159_v46 = vld [vmem:[%s6636_s9 + $0x1b0] sm:$0xf0]  ;;  %v3141_v50 = vld [vmem:[%s6636_s9 + $0x180] sm:$0xf] }
  0x18   :  { %v3162_v47 = vor.u32 %v4174_v45, %v3159_v46  ;;  %v4440_v51 = vmov 8.0   ;;  %v4138_v54 = vld [vmem:[%s6636_s9 + $0x84] sm:$0xf]  ;;  %v3015_v55 = vld [vmem:[%s6636_s9 + $0x90] sm:$0xf0] }
  0x19   :  { %272 = vmatpush.bf16.msra.mxu2 %v2902_v52  ;;  %4412 = vrcp.f32 %v4440_v51  ;;  %v3014_v52 = vor.u32 %v4140_v49, %v3013_v48  ;;  %v4170_v58 = vld [vmem:[%s6636_s9 + $0x184] sm:$0xf]  ;;  %v2997_v61 = vld [vmem:[%s6636_s9 + $0x60] sm:$0xf]  ;;  %v4136_v62 = vld [vmem:[%s6636_s9 + $0x6c] sm:$0xf0] }
  0x1a   :  { %285 = vmatpush.bf16.msra.mxu3 %v2906_v53  ;;  %v4172_v53 = vld [vmem:[%s6636_s9 + $0x18c] sm:$0xf0]  ;;  %v2998_v0 = vor.u32 %v4136_v62, %v2997_v61  ;;  %v3109_v13 = vld [vmem:[%s6636_s9 + $0x140] sm:$0xf]  ;;  %v4130_v16 = vld [vmem:[%s6636_s9 + $0x44] sm:$0xf] }
  0x1b   :  { %149 = vmatpush.bf16.msra.mxu1 %v4100_v38  ;;  %v3157_v38 = vld [vmem:[%s6636_s9 + $0x1a0] sm:$0xf]  ;;  %v3142_v56 = vor.u32 %v4172_v53, %v3141_v50  ;;  %v4132_v12 = vld [vmem:[%s6636_s9 + $0x4c] sm:$0xf0]  ;;  %v2983_v17 = vld [vmem:[%s6636_s9 + $0x50] sm:$0xf0] }
  0x1c   :  { %v3158_v43 = vor.u32 %v4176_v40, %v3157_v38  ;;  %v4164_v15 = vld [vmem:[%s6636_s9 + $0x14c] sm:$0xf0]  ;;  %v2986_v20 = vor.u32 %v4130_v16, %v2983_v17  ;;  %v3111_v22 = vld [vmem:[%s6636_s9 + $0x150] sm:$0xf0]  ;;  %v2965_v26 = vld [vmem:[%s6636_s9 + $0x20] sm:$0xf] }
  0x1d   :  { %273 = vmatpush.bf16.msra.mxu2 %v2894_v57  ;;  %v3018_v57 = vor.u32 %v4138_v54, %v3015_v55  ;;  %v3110_v19 = vor.u32 %v4164_v15, %v3109_v13  ;;  %v4128_v27 = vld [vmem:[%s6636_s9 + $0x2c] sm:$0xf0]  ;;  %v3093_v28 = vld [vmem:[%s6636_s9 + $0x120] sm:$0xf]  ;;  %v4158_v38 = vld [vmem:[%s6636_s9 + $0x124] sm:$0xf] }
  0x1e   :  { %286 = vmatpush.bf16.msra.mxu3 %v2898_v59  ;;  %v3143_v59 = vld [vmem:[%s6636_s9 + $0x190] sm:$0xf0]  ;;  %v2966_v29 = vor.u32 %v4128_v27, %v2965_v26  ;;  %v4160_v30 = vld [vmem:[%s6636_s9 + $0x12c] sm:$0xf0]  ;;  %v3077_v45 = vld [vmem:[%s6636_s9 + $0x100] sm:$0xf] }
  0x1f   :  { %150 = vmatpush.bf16.msra.mxu1 %v4099_v39  ;;  %v3030_v39 = vor.u32 %v4144_v37, %v3029_v36  ;;  %v3146_v60 = vor.u32 %v4170_v58, %v3143_v59  ;;  %v3094_v36 = vor.u32 %v4160_v30, %v3093_v28  ;;  %v4156_v50 = vld [vmem:[%s6636_s9 + $0x10c] sm:$0xf0]  ;;  %v4122_v51 = vld [vmem:[%s6636_s9 + $0x4] sm:$0xf]  ;;  %v2951_v55 = vld [vmem:[%s6636_s9 + $0x10] sm:$0xf0] }
  0x20   :  { %v3078_v54 = vor.u32 %v4156_v50, %v3077_v45  ;;  %v3069_v62 = vld [vmem:[%s6636_s9 + $0xe8] sm:$0xf]  ;;  %v3055_v30 = vld [vmem:[%s6636_s9 + $0xd8] sm:$0xf0]  ;;  %v4143_v50 = vld [vmem:[%s6636_s9 + $0xac] sm:$0xf] }
  0x21   :  { %274 = vmatpush.bf16.msra.mxu2 %v2886_v63  ;;  %780 = vmatpush.bf16.msrb.mxu0 %v3030_v39  ;;  %v3125_v63 = vld [vmem:[%s6636_s9 + $0x160] sm:$0xf]  ;;  %v3095_v39 = vld [vmem:[%s6636_s9 + $0x130] sm:$0xf0]  ;;  %v3165_v45 = vld [vmem:[%s6636_s9 + $0x1a8] sm:$0xf] }
  0x22   :  { %2882 = vmatmul.msk.bf16.vlgmr.msra.gmra.mxu1 %vm135_vm3, %v52_v41  ;;  %287 = vmatpush.bf16.msra.mxu3 %v2890_v1  ;;  %v4142_v41 = vld [vmem:[%s6636_s9 + $0xa4] sm:$0xf]  ;;  %v4168_v1 = vld [vmem:[%s6636_s9 + $0x16c] sm:$0xf0] }
  0x23   :  { %791 = vmatpush.bf16.msrb.mxu1 %v3190_v18  ;;  %v3034_v44 = vor.u32 %v4142_v41, %v3031_v42  ;;  %v3098_v42 = vor.u32 %v4158_v38, %v3095_v39 }
  0x25   :  { %804 = vmatpush.bf16.msrb.mxu2 %v3066_v21  ;;  %781 = vmatpush.bf16.msrb.mxu0 %v3014_v52  ;;  %v4162_v21 = vld [vmem:[%s6636_s9 + $0x144] sm:$0xf] }
  0x26   :  { %817 = vmatpush.bf16.msrb.mxu3 %v3194_v23  ;;  %v3114_v25 = vor.u32 %v4162_v21, %v3111_v22 }
  0x27   :  { %792 = vmatpush.bf16.msrb.mxu1 %v3174_v31  ;;  %v4126_v31 = vld [vmem:[%s6636_s9 + $0x24] sm:$0xf] }
  0x29   :  { %805 = vmatpush.bf16.msrb.mxu2 %v3050_v32  ;;  %782 = vmatpush.bf16.msrb.mxu0 %v2998_v0  ;;  %v2967_v32 = vld [vmem:[%s6636_s9 + $0x30] sm:$0xf0]  ;;  %v2954_v0 = vor.u32 %v4122_v51, %v2951_v55 }
  0x2a   :  { %818 = vmatpush.bf16.msrb.mxu3 %v3178_v35  ;;  %v2970_v37 = vor.u32 %v4126_v31, %v2967_v32 }
  0x2b   :  { %793 = vmatpush.bf16.msrb.mxu1 %v3158_v43  ;;  %v2949_v43 = vld [vmem:[%s6636_s9] sm:$0xf] }
  0x2d   :  { %806 = vmatpush.bf16.msrb.mxu2 %v3034_v44  ;;  %v4124_v44 = vld [vmem:[%s6636_s9 + $0xc] sm:$0xf0] }
  0x2e   :  { %819 = vmatpush.bf16.msrb.mxu3 %v3162_v47  ;;  %v2950_v53 = vor.u32 %v4124_v44, %v2949_v43  ;;  %v3037_v43 = vld [vmem:[%s6636_s9 + $0xa8] sm:$0xf]  ;;  %v4145_v44 = vld [vmem:[%s6636_s9 + $0xb4] sm:$0xf0] }
  0x2f   :  { %794 = vmatpush.bf16.msrb.mxu1 %v3142_v56  ;;  %v4154_v56 = vld [vmem:[%s6636_s9 + $0x104] sm:$0xf] }
  0x31   :  { %807 = vmatpush.bf16.msrb.mxu2 %v3018_v57  ;;  %v3079_v57 = vld [vmem:[%s6636_s9 + $0x110] sm:$0xf0] }
  0x32   :  { %820 = vmatpush.bf16.msrb.mxu3 %v3146_v60 }
  0x85   :  { %v92_v2 = vpop.f32.mrf.mxu0 }
  0x8d   :  { %v94_v3 = vpop.f32.mrf.mxu0 }
  0x8e   :  { %v2999_v3 = vld [vmem:[%s6636_s9 + $0x70] sm:$0xf0] }
  0x9f   :  { %v152_v5 = vpop.f32.mrf.mxu1 }
  0xa0   :  { %v153_v6 = vadd.f32 %v152_v5, %v92_v2  ;;  %v4134_v2 = vld [vmem:[%s6636_s9 + $0x64] sm:$0xf] }
  0xa1   :  { %v3002_v5 = vor.u32 %v4134_v2, %v2999_v3  ;;  %v3197_v3 = vld [vmem:[%s6636_s9 + $0x1e8] sm:$0xf] }
  0xa2   :  { %v160_v7 = vadd.f32 %v4411_v4, %v153_v6  ;;  %v3126_v4 = vor.u32 %v4168_v1, %v3125_v63  ;;  %v4166_v6 = vld [vmem:[%s6636_s9 + $0x164] sm:$0xf]  ;;  %v4153_v63 = vld [vmem:[%s6636_s9 + $0xf4] sm:$0xf0]  ;;  %v3082_v1 = vor.u32 %v4154_v56, %v3079_v57 }
  0xa3   :  { %808 = vmatpush.bf16.msrb.mxu2 %v3002_v5  ;;  %v3070_v2 = vor.u32 %v4153_v63, %v3069_v62  ;;  %v4151_v5 = vld [vmem:[%s6636_s9 + $0xec] sm:$0xf] }
  0xa4   :  { %vm161_vm4 = vcmp.gt.f32.partialorder %v160_v7, 0.0  ;;  %v162_v8 = vmul.f32 0.2, %v160_v7  ;;  %795 = vmatpush.bf16.msrb.mxu1 %v3126_v4  ;;  %v4185_v4 = vld [vmem:[%s6636_s9 + $0x1f4] sm:$0xf0] }
  0xa5   :  { %v3198_v16 = vor.u32 %v4185_v4, %v3197_v3 }
  0xa6   :  { %v163_v9 = vsel %vm161_vm4, %v160_v7, %v162_v8  ;;  %v3127_v7 = vld [vmem:[%s6636_s9 + $0x170] sm:$0xf0]  ;;  %v4774_v8 = vpop.eup %4412 }
  0xa7   :  { %v154_v10 = vpop.f32.mrf.mxu1  ;;  %v164_v11 = vpack.c.bf16 %v163_v9, %v163_v9  ;;  %v181_v9 = vld [vmem:[%s6637_s6] sm:$0x3]  ;;  %v308_v18 = vmul.f32 8.0, %v4774_v8  ;;  %809 = vmatpush.bf16.msrb.mxu2 %v2986_v20  ;;  %v4149_v20 = vld [vmem:[%s6636_s9 + $0xd4] sm:$0xf0]  ;;  %vm312_vm5 = vweird.f32 %v4774_v8 }
  0xa8   :  { %v3130_v10 = vor.u32 %v4166_v6, %v3127_v7  ;;  %v183_v23 = vperm.slane %v181_v9, 0  ;;  %v184_v24 = vperm.slane %v181_v9, 1  ;;  %796 = vmatpush.bf16.msrb.mxu1 %v3110_v19  ;;  %v3053_v19 = vld [vmem:[%s6636_s9 + $0xc8] sm:$0xf] }
  0xa9   :  { %275 = vmatmul.bf16.vlgmr.msra.gmra.mxu2 %v164_v11  ;;  %288 = vmatmul.bf16.vlgmr.msra.gmra.mxu3 %v164_v11  ;;  %v2981_v11 = vld [vmem:[%s6636_s9 + $0x40] sm:$0xf]  ;;  %v309_v34 = vsub.f32 1.0, %v308_v18  ;;  %v3199_v18 = vld [vmem:[%s6636_s9 + $0x1f8] sm:$0xf0]  ;;  %v3054_v28 = vor.u32 %v4149_v20, %v3053_v19 }
  0xaa   :  { %v2982_v14 = vor.u32 %v4132_v12, %v2981_v11  ;;  %821 = vmatpush.bf16.msrb.mxu3 %v3130_v10  ;;  %v3071_v11 = vld [vmem:[%s6636_s9 + $0xf8] sm:$0xf0]  ;;  %v4183_v12 = vld [vmem:[%s6636_s9 + $0x1ec] sm:$0xf]  ;;  %v3133_v19 = vld [vmem:[%s6636_s9 + $0x168] sm:$0xf] }
  0xab   :  { %810 = vmatpush.bf16.msrb.mxu2 %v2970_v37  ;;  %v310_v52 = vmul.f32 %v4774_v8, %v309_v34  ;;  %v3074_v17 = vor.u32 %v4151_v5, %v3071_v11  ;;  %v3202_v27 = vor.u32 %v4183_v12, %v3199_v18  ;;  %v4169_v20 = vld [vmem:[%s6636_s9 + $0x174] sm:$0xf0] }
  0xac   :  { %783 = vmatpush.bf16.msrb.mxu0 %v2982_v14  ;;  %797 = vmatpush.bf16.msrb.mxu1 %v3094_v36  ;;  %v3183_v36 = vld [vmem:[%s6636_s9 + $0x1d8] sm:$0xf0] }
  0xad   :  { %v311_v13 = vadd.f32 %v4774_v8, %v310_v52 }
  0xae   :  { %822 = vmatpush.bf16.msrb.mxu3 %v3114_v25  ;;  %v4181_v25 = vld [vmem:[%s6636_s9 + $0x1d4] sm:$0xf0] }
  0xaf   :  { %811 = vmatpush.bf16.msrb.mxu2 %v2954_v0  ;;  %v4918_v37 = vsel %vm312_vm5, %v4774_v8, %v311_v13  ;;  %v3149_v0 = vld [vmem:[%s6636_s9 + $0x188] sm:$0xf] }
  0xb0   :  { %784 = vmatpush.bf16.msrb.mxu0 %v2966_v29  ;;  %798 = vmatpush.bf16.msrb.mxu1 %v3078_v54  ;;  %v4147_v29 = vld [vmem:[%s6636_s9 + $0xcc] sm:$0xf] }
  0xb1   :  { %v3058_v39 = vor.u32 %v4147_v29, %v3055_v30  ;;  %v4175_v54 = vld [vmem:[%s6636_s9 + $0x1ac] sm:$0xf]  ;;  %v3135_v29 = vld [vmem:[%s6636_s9 + $0x178] sm:$0xf0]  ;;  %v2989_v30 = vld [vmem:[%s6636_s9 + $0x48] sm:$0xf] }
  0xb2   :  { %823 = vmatpush.bf16.msrb.mxu3 %v3098_v42 }
  0xb3   :  { %856 = vmatpush.bf16.msra.mxu2 %v3074_v17 }
  0xb4   :  { %785 = vmatpush.bf16.msrb.mxu0 %v2950_v53  ;;  %843 = vmatpush.bf16.msra.mxu1 %v3198_v16  ;;  %v3039_v53 = vld [vmem:[%s6636_s9 + $0xb8] sm:$0xf0]  ;;  %v4137_v16 = vld [vmem:[%s6636_s9 + $0x74] sm:$0xf0] }
  0xb6   :  { %824 = vmatpush.bf16.msrb.mxu3 %v3082_v1  ;;  %v4173_v1 = vld [vmem:[%s6636_s9 + $0x194] sm:$0xf0] }
  0xb7   :  { %857 = vmatpush.bf16.msra.mxu2 %v3058_v39  ;;  %v3150_v12 = vor.u32 %v4173_v1, %v3149_v0  ;;  %v4163_v39 = vld [vmem:[%s6636_s9 + $0x14c] sm:$0xf]  ;;  %v4157_v1 = vld [vmem:[%s6636_s9 + $0x114] sm:$0xf0] }
  0xb8   :  { %830 = vmatpush.bf16.msra.mxu0 %v3070_v2  ;;  %v4139_v2 = vld [vmem:[%s6636_s9 + $0x8c] sm:$0xf] }
  0xba   :  { %869 = vmatpush.bf16.msra.mxu3 %v3202_v27 }
  0xbc   :  { %831 = vmatpush.bf16.msra.mxu0 %v3054_v28  ;;  %v4167_v28 = vld [vmem:[%s6636_s9 + $0x16c] sm:$0xf] }
 0x12c   :  { %v276_v33 = vpop.f32.mrf.mxu2  ;;  %v289_v35 = vpop.f32.mrf.mxu3 }
 0x12d   :  { %v4828_v40 = vadd.f32 %v276_v33, %v183_v23  ;;  %v4830_v41 = vadd.f32 %v289_v35, %v184_v24  ;;  %v3181_v24 = vld [vmem:[%s6636_s9 + $0x1c8] sm:$0xf]  ;;  %v4179_v35 = vld [vmem:[%s6636_s9 + $0x1cc] sm:$0xf] }
 0x12e   :  { %v3182_v34 = vor.u32 %v4181_v25, %v3181_v24  ;;  %v3186_v42 = vor.u32 %v4179_v35, %v3183_v36  ;;  %v3007_v24 = vld [vmem:[%s6636_s9 + $0x78] sm:$0xf0]  ;;  %v4131_v35 = vld [vmem:[%s6636_s9 + $0x4c] sm:$0xf] }
 0x12f   :  { %v295_v46 = vrot.slane %v4828_v40, 4  ;;  %v316_v47 = vmul.f32 %v4828_v40, %v4828_v40  ;;  %v301_v48 = vrot.slane %v4830_v41, 4  ;;  %v317_v49 = vmul.f32 %v4830_v41, %v4830_v41  ;;  %v2991_v36 = vld [vmem:[%s6636_s9 + $0x58] sm:$0xf0] }
 0x130   :  { %844 = vmatpush.bf16.msra.mxu1 %v3182_v34  ;;  %870 = vmatpush.bf16.msra.mxu3 %v3186_v42  ;;  %v4165_v34 = vld [vmem:[%s6636_s9 + $0x154] sm:$0xf0]  ;;  %v3119_v42 = vld [vmem:[%s6636_s9 + $0x158] sm:$0xf0] }
 0x131   :  { %v296_v58 = vadd.f32 %v295_v46, %v4828_v40  ;;  %v318_v59 = vrot.slane %v316_v47, 4  ;;  %v302_v60 = vadd.f32 %v301_v48, %v4830_v41  ;;  %v324_v61 = vrot.slane %v317_v49, 4 }
 0x132   :  { %v3038_v48 = vor.u32 %v4145_v44, %v3037_v43  ;;  %v2994_v44 = vor.u32 %v4131_v35, %v2991_v36 }
 0x133   :  { %v297_v6 = vrot.slane %v296_v58, 2  ;;  %v319_v7 = vadd.f32 %v318_v59, %v316_v47  ;;  %v303_v9 = vrot.slane %v302_v60, 2  ;;  %v325_v10 = vadd.f32 %v324_v61, %v317_v49  ;;  %v4177_v49 = vld [vmem:[%s6636_s9 + $0x1b4] sm:$0xf0]  ;;  %v3167_v59 = vld [vmem:[%s6636_s9 + $0x1b8] sm:$0xf0] }
 0x134   :  { %v278_v14 = vpop.f32.mrf.mxu2  ;;  %v291_v15 = vpop.f32.mrf.mxu3  ;;  %v3166_v52 = vor.u32 %v4177_v49, %v3165_v45  ;;  %v4141_v61 = vld [vmem:[%s6636_s9 + $0x94] sm:$0xf0]  ;;  %v3170_v63 = vor.u32 %v4175_v54, %v3167_v59  ;;  %832 = vmatpush.bf16.msra.mxu0 %v3038_v48  ;;  %v2973_v45 = vld [vmem:[%s6636_s9 + $0x28] sm:$0xf]  ;;  %v4127_v48 = vld [vmem:[%s6636_s9 + $0x2c] sm:$0xf] }
 0x135   :  { %v298_v21 = vadd.f32 %v297_v6, %v296_v58  ;;  %v320_v22 = vrot.slane %v319_v7, 2  ;;  %v304_v23 = vadd.f32 %v303_v9, %v302_v60  ;;  %v326_v26 = vrot.slane %v325_v10, 2  ;;  %v3021_v60 = vld [vmem:[%s6636_s9 + $0x88] sm:$0xf]  ;;  %v4171_v9 = vld [vmem:[%s6636_s9 + $0x18c] sm:$0xf] }
 0x136   :  { %v3042_v58 = vor.u32 %v4143_v50, %v3039_v53  ;;  %v3022_v6 = vor.u32 %v4141_v61, %v3021_v60  ;;  %845 = vmatpush.bf16.msra.mxu1 %v3166_v52  ;;  %v3005_v15 = vld [vmem:[%s6636_s9 + $0x68] sm:$0xf]  ;;  %871 = vmatpush.bf16.msra.mxu3 %v3170_v63  ;;  %v2975_v49 = vld [vmem:[%s6636_s9 + $0x38] sm:$0xf0]  ;;  %v3122_v50 = vor.u32 %v4163_v39, %v3119_v42  ;;  %v4159_v53 = vld [vmem:[%s6636_s9 + $0x12c] sm:$0xf] }
 0x137   :  { %v299_v31 = vrot.slane %v298_v21, 1  ;;  %v321_v32 = vadd.f32 %v320_v22, %v319_v7  ;;  %v305_v33 = vrot.slane %v304_v23, 1  ;;  %v327_v38 = vadd.f32 %v326_v26, %v325_v10  ;;  %v3023_v7 = vld [vmem:[%s6636_s9 + $0x98] sm:$0xf0]  ;;  %v2957_v61 = vld [vmem:[%s6636_s9 + $0x8] sm:$0xf] }
 0x138   :  { %v3151_v10 = vld [vmem:[%s6636_s9 + $0x198] sm:$0xf0]  ;;  %858 = vmatpush.bf16.msra.mxu2 %v3042_v58  ;;  %v3026_v14 = vor.u32 %v4139_v2, %v3023_v7  ;;  %833 = vmatpush.bf16.msra.mxu0 %v3022_v6  ;;  %v3006_v22 = vor.u32 %v4137_v16, %v3005_v15  ;;  %v3134_v26 = vor.u32 %v4169_v20, %v3133_v19  ;;  %v3085_v63 = vld [vmem:[%s6636_s9 + $0x108] sm:$0xf]  ;;  %v4123_v2 = vld [vmem:[%s6636_s9 + $0xc] sm:$0xf] }
 0x139   :  { %v300_v46 = vadd.f32 %v299_v31, %v298_v21  ;;  %v322_v47 = vrot.slane %v321_v32, 1  ;;  %v306_v8 = vadd.f32 %v305_v33, %v304_v23  ;;  %v328_v51 = vrot.slane %v327_v38, 1  ;;  %v4135_v23 = vld [vmem:[%s6636_s9 + $0x6c] sm:$0xf]  ;;  %v4133_v31 = vld [vmem:[%s6636_s9 + $0x54] sm:$0xf0] }
 0x13a   :  { %v3154_v18 = vor.u32 %v4171_v9, %v3151_v10  ;;  %846 = vmatpush.bf16.msra.mxu1 %v3150_v12  ;;  %v3010_v27 = vor.u32 %v4135_v23, %v3007_v24  ;;  %v3138_v33 = vor.u32 %v4167_v28, %v3135_v29  ;;  %v3103_v54 = vld [vmem:[%s6636_s9 + $0x138] sm:$0xf0]  ;;  %v2978_v60 = vor.u32 %v4127_v48, %v2975_v49  ;;  %v4155_v9 = vld [vmem:[%s6636_s9 + $0x10c] sm:$0xf]  ;;  %v293_v15 = vld [vmem:[%s6638_s7] sm:$0x3] }
 0x13b   :  { %v4942_v55 = vmul.f32 %v4918_v37, %v300_v46  ;;  %v323_v56 = vadd.f32 %v322_v47, %v321_v32  ;;  %v4945_v57 = vmul.f32 %v4918_v37, %v306_v8  ;;  %v329_v62 = vadd.f32 %v328_v51, %v327_v38  ;;  %v3117_v32 = vld [vmem:[%s6636_s9 + $0x148] sm:$0xf]  ;;  %v4129_v46 = vld [vmem:[%s6636_s9 + $0x34] sm:$0xf0]  ;;  %v3087_v10 = vld [vmem:[%s6636_s9 + $0x118] sm:$0xf0] }
 0x13c   :  { %859 = vmatpush.bf16.msra.mxu2 %v3026_v14  ;;  %872 = vmatpush.bf16.msra.mxu3 %v3154_v18  ;;  %v2990_v38 = vor.u32 %v4133_v31, %v2989_v30  ;;  %v3118_v43 = vor.u32 %v4165_v34, %v3117_v32  ;;  %v3101_v47 = vld [vmem:[%s6636_s9 + $0x128] sm:$0xf]  ;;  %v4161_v8 = vld [vmem:[%s6636_s9 + $0x134] sm:$0xf0]  ;;  %v2974_v52 = vor.u32 %v4129_v46, %v2973_v45  ;;  %v294_v20 = vld [vmem:[%s6639_s8] sm:$0x3] }
 0x13d   :  { %v330_v3 = vmul.f32 %v323_v56, %v4918_v37  ;;  %v332_v4 = vmul.f32 %v4942_v55, %v4942_v55  ;;  %v333_v5 = vmul.f32 %v4945_v57, %v4945_v57  ;;  %v331_v11 = vmul.f32 %v329_v62, %v4918_v37  ;;  %834 = vmatpush.bf16.msra.mxu0 %v3006_v22  ;;  %v4125_v62 = vld [vmem:[%s6636_s9 + $0x14] sm:$0xf0]  ;;  %v4231_v45 = vld [vmem:[%s6640_s13 + $0x168] sm:$0xf0] }
 0x13e   :  { %847 = vmatpush.bf16.msra.mxu1 %v3134_v26  ;;  %v3102_v59 = vor.u32 %v4161_v8, %v3101_v47  ;;  %v2958_v7 = vor.u32 %v4125_v62, %v2957_v61  ;;  %v3086_v12 = vor.u32 %v4157_v1, %v3085_v63  ;;  %v336_v22 = vsub.f32 %v4828_v40, %v4942_v55  ;;  %v3625_v47 = vld [vmem:[%s6640_s13 + $0x348] sm:$0xf]  ;;  %v4294_v8 = vld [vmem:[%s6640_s13 + $0x360] sm:$0xf0]  ;;  %v3345_v49 = vld [vmem:[%s6640_s13 + $0x118] sm:$0xf] }
 0x13f   :  { %v334_v13 = vsub.f32 %v330_v3, %v332_v4  ;;  %v335_v17 = vsub.f32 %v331_v11, %v333_v5  ;;  %v2959_v3 = vld [vmem:[%s6636_s9 + $0x18] sm:$0xf0]  ;;  %v3106_v5 = vor.u32 %v4159_v53, %v3103_v54  ;;  %v363_v23 = vperm.slane %v293_v15, 0  ;;  %v4287_v53 = vld [vmem:[%s6640_s13 + $0x328] sm:$0xf0] }
 0x140   :  { %860 = vmatpush.bf16.msra.mxu2 %v3010_v27  ;;  %873 = vmatpush.bf16.msra.mxu3 %v3138_v33  ;;  %v337_v27 = vsub.f32 %v4830_v41, %v4945_v57  ;;  %v370_v30 = vperm.slane %v294_v20, 0  ;;  %v371_v32 = vperm.slane %v294_v20, 1  ;;  %v4238_v41 = vld [vmem:[%s6640_s13 + $0x1a0] sm:$0xf0]  ;;  %v3626_v48 = vor.u32 %v4294_v8, %v3625_v47  ;;  %v4280_v61 = vld [vmem:[%s6640_s13 + $0x2f0] sm:$0xf0] }
 0x141   :  { %v4992_v21 = vadd.f32 0.8, %v334_v13  ;;  %v5000_v25 = vadd.f32 0.8, %v335_v17  ;;  %835 = vmatpush.bf16.msra.mxu0 %v2990_v38  ;;  %v2962_v13 = vor.u32 %v4123_v2, %v2959_v3  ;;  %v3090_v17 = vor.u32 %v4155_v9, %v3087_v10  ;;  %v3289_v63 = vld [vmem:[%s6640_s13 + $0xa8] sm:$0xf] }
 0x142   :  { %848 = vmatpush.bf16.msra.mxu1 %v3118_v43  ;;  %v3849_v1 = vld [vmem:[%s6640_s13 + $0x508] sm:$0xf]  ;;  %v4350_v3 = vld [vmem:[%s6640_s13 + $0x520] sm:$0xf0]  ;;  %v3261_v9 = vld [vmem:[%s6640_s13 + $0x70] sm:$0xf] }
 0x143   :  { %4414 = vrsqrt.f32 %v4992_v21  ;;  %vm346_vm8 = vweird.f32 %v4992_v21  ;;  %vm356_vm10 = vweird.f32 %v5000_v25  ;;  %v4203_v10 = vld [vmem:[%s6640_s13 + $0x88] sm:$0xf0] }
 0x144   :  { %4416 = vrsqrt.f32 %v5000_v25  ;;  %861 = vmatpush.bf16.msra.mxu2 %v2994_v44  ;;  %874 = vmatpush.bf16.msra.mxu3 %v3122_v50  ;;  %v3373_v44 = vld [vmem:[%s6640_s13 + $0x150] sm:$0xf]  ;;  %v4224_v50 = vld [vmem:[%s6640_s13 + $0x130] sm:$0xf0] }
 0x145   :  { %836 = vmatpush.bf16.msra.mxu0 %v2974_v52  ;;  %v3374_v46 = vor.u32 %v4231_v45, %v3373_v44  ;;  %v3597_v52 = vld [vmem:[%s6640_s13 + $0x310] sm:$0xf]  ;;  %v4017_v44 = vld [vmem:[%s6640_s13 + $0x658] sm:$0xf] }
 0x146   :  { %849 = vmatpush.bf16.msra.mxu1 %v3102_v59  ;;  %v3598_v54 = vor.u32 %v4287_v53, %v3597_v52  ;;  %v3375_v52 = vld [vmem:[%s6640_s13 + $0x16c] sm:$0xf0] }
 0x148   :  { %862 = vmatpush.bf16.msra.mxu2 %v2978_v60  ;;  %875 = vmatpush.bf16.msra.mxu3 %v3106_v5  ;;  %v3569_v60 = vld [vmem:[%s6640_s13 + $0x2d8] sm:$0xf]  ;;  %v3541_v5 = vld [vmem:[%s6640_s13 + $0x2a0] sm:$0xf] }
 0x149   :  { %v4415_v51 = vpop.eup %4414  ;;  %837 = vmatpush.bf16.msra.mxu0 %v2958_v7  ;;  %v3570_v62 = vor.u32 %v4280_v61, %v3569_v60  ;;  %v4385_v61 = vld [vmem:[%s6640_s13 + $0x638] sm:$0xf0] }
 0x14a   :  { %v4417_v56 = vpop.eup %4416  ;;  %v341_v58 = vmul.f32 %v4415_v51, %v4992_v21  ;;  %vm347_vm6 = vweird.f32 %v4415_v51  ;;  %850 = vmatpush.bf16.msra.mxu1 %v3086_v12  ;;  %v364_v21 = vperm.slane %v293_v15, 1  ;;  %v3262_v12 = vor.u32 %v4203_v10, %v3261_v9  ;;  %v3513_v15 = vld [vmem:[%s6640_s13 + $0x268] sm:$0xf]  ;;  %v3347_v9 = vld [vmem:[%s6640_s13 + $0x134] sm:$0xf0] }
 0x14b   :  { %v351_v0 = vmul.f32 %v4417_v56, %v5000_v25  ;;  %vm357_vm7 = vweird.f32 %v4417_v56  ;;  %vm348_vm9 = vmor %vm346_vm8, %vm347_vm6  ;;  %v3401_v25 = vld [vmem:[%s6640_s13 + $0x188] sm:$0xf] }
 0x14c   :  { %v342_v4 = vmul.f32 %v4415_v51, %v341_v58  ;;  %863 = vmatpush.bf16.msra.mxu2 %v2962_v13  ;;  %vm358_vm11 = vmor %vm356_vm10, %vm357_vm7  ;;  %876 = vmatpush.bf16.msra.mxu3 %v3090_v17  ;;  %v3402_v42 = vor.u32 %v4238_v41, %v3401_v25  ;;  %v4217_v58 = vld [vmem:[%s6640_s13 + $0xf8] sm:$0xf0]  ;;  %v4343_v13 = vld [vmem:[%s6640_s13 + $0x4e8] sm:$0xf0] }
 0x14d   :  { %v352_v6 = vmul.f32 %v4417_v56, %v351_v0  ;;  %v4210_v0 = vld [vmem:[%s6640_s13 + $0xc0] sm:$0xf0]  ;;  %v4073_v17 = vld [vmem:[%s6640_s13 + $0x6c8] sm:$0xf]  ;;  %v3765_v25 = vld [vmem:[%s6640_s13 + $0x460] sm:$0xf] }
 0x14e   :  { %v343_v11 = vmul.f32 0.5, %v342_v4  ;;  %v3290_v2 = vor.u32 %v4210_v0, %v3289_v63  ;;  %v3850_v4 = vor.u32 %v4350_v3, %v3849_v1  ;;  %v4329_v41 = vld [vmem:[%s6640_s13 + $0x478] sm:$0xf0]  ;;  %v3627_v63 = vld [vmem:[%s6640_s13 + $0x364] sm:$0xf0] }
 0x14f   :  { %v353_v14 = vmul.f32 0.5, %v352_v6  ;;  %v4273_v6 = vld [vmem:[%s6640_s13 + $0x2b8] sm:$0xf0] }
 0x150   :  { %v344_v16 = vsub.f32 1.5, %v343_v11  ;;  %v3542_v7 = vor.u32 %v4273_v6, %v3541_v5  ;;  %v3821_v11 = vld [vmem:[%s6640_s13 + $0x4d0] sm:$0xf]  ;;  %v4315_v5 = vld [vmem:[%s6640_s13 + $0x408] sm:$0xf0] }
 0x151   :  { %v354_v18 = vsub.f32 1.5, %v353_v14  ;;  %v3822_v14 = vor.u32 %v4343_v13, %v3821_v11  ;;  %v3961_v13 = vld [vmem:[%s6640_s13 + $0x5e8] sm:$0xf] }
 0x152   :  { %v345_v19 = vmul.f32 %v4415_v51, %v344_v16  ;;  %v4266_v16 = vld [vmem:[%s6640_s13 + $0x280] sm:$0xf0] }
 0x153   :  { %v355_v24 = vmul.f32 %v4417_v56, %v354_v18  ;;  %v3514_v18 = vor.u32 %v4266_v16, %v3513_v15  ;;  %v4284_v16 = vld [vmem:[%s6640_s13 + $0x314] sm:$0xf] }
 0x154   :  { %v349_v26 = vsel %vm348_vm9, %v4415_v51, %v345_v19  ;;  %v3346_v51 = vor.u32 %v4224_v50, %v3345_v49  ;;  %v4406_v19 = vld [vmem:[%s6640_s13 + $0x6e0] sm:$0xf0] }
 0x155   :  { %v360_v28 = vmul.f32 %v349_v26, %v336_v22  ;;  %v359_v29 = vsel %vm358_vm11, %v4417_v56, %v355_v24  ;;  %v3317_v56 = vld [vmem:[%s6640_s13 + $0xe0] sm:$0xf]  ;;  %v4074_v20 = vor.u32 %v4406_v19, %v4073_v17  ;;  %v3233_v22 = vld [vmem:[%s6640_s13 + $0x38] sm:$0xf]  ;;  %v4322_v49 = vld [vmem:[%s6640_s13 + $0x440] sm:$0xf0] }
 0x156   :  { %v361_v31 = vmul.f32 %v359_v29, %v337_v27  ;;  %v3318_v59 = vor.u32 %v4217_v58, %v3317_v56  ;;  %v3793_v24 = vld [vmem:[%s6640_s13 + $0x498] sm:$0xf]  ;;  %v4336_v27 = vld [vmem:[%s6640_s13 + $0x4b0] sm:$0xf0]  ;;  %v4259_v29 = vld [vmem:[%s6640_s13 + $0x248] sm:$0xf0] }
 0x157   :  { %v367_v33 = vmul.f32 %v363_v23, %v360_v28  ;;  %v4196_v23 = vld [vmem:[%s6640_s13 + $0x50] sm:$0xf0]  ;;  %v3485_v28 = vld [vmem:[%s6640_s13 + $0x230] sm:$0xf]  ;;  %v4245_v56 = vld [vmem:[%s6640_s13 + $0x1d8] sm:$0xf0] }
 0x158   :  { %v368_v34 = vmul.f32 %v364_v21, %v361_v31  ;;  %v3234_v26 = vor.u32 %v4196_v23, %v3233_v22  ;;  %v3794_v21 = vor.u32 %v4336_v27, %v3793_v24  ;;  %v3486_v31 = vor.u32 %v4259_v29, %v3485_v28  ;;  %v3989_v58 = vld [vmem:[%s6640_s13 + $0x620] sm:$0xf]  ;;  %v3599_v17 = vld [vmem:[%s6640_s13 + $0x32c] sm:$0xf0]  ;;  %v3681_v22 = vld [vmem:[%s6640_s13 + $0x3b8] sm:$0xf] }
 0x159   :  { %v374_v40 = vadd.f32 %v370_v30, %v367_v33  ;;  %v5201_v30 = vld [vmem:[%s6641_s10] sm:$0xf]  ;;  %v4399_v33 = vld [vmem:[%s6640_s13 + $0x6a8] sm:$0xf0]  ;;  %v4308_v23 = vld [vmem:[%s6640_s13 + $0x3d0] sm:$0xf0] }
 0x15a   :  { %v375_v55 = vadd.f32 %v371_v32, %v368_v34  ;;  %v4045_v32 = vld [vmem:[%s6640_s13 + $0x690] sm:$0xf]  ;;  %v450_v47 = vperm.slane %v5201_v30, 0  ;;  %v451_v11 = vperm.slane %v5201_v30, 1  ;;  %v4214_v27 = vld [vmem:[%s6640_s13 + $0xe4] sm:$0xf] }
 0x15b   :  { %vm376_vm12 = vcmp.gt.f32.partialorder %v374_v40, 0.0  ;;  %v378_v35 = vmul.f32 0.2, %v374_v40  ;;  %v4046_v34 = vor.u32 %v4399_v33, %v4045_v32 }
 0x15c   :  { %vm377_vm13 = vcmp.gt.f32.partialorder %v375_v55, 0.0  ;;  %v379_v57 = vmul.f32 0.2, %v375_v55 }
 0x15d   :  { %v380_v36 = vsel %vm376_vm12, %v374_v40, %v378_v35  ;;  %v3205_v40 = vld [vmem:[%s6640_s13] sm:$0xf] }
 0x15e   :  { %v382_v38 = vpack.c.bf16 %v380_v36, %v380_v36  ;;  %v381_v39 = vsel %vm377_vm13, %v375_v55, %v379_v57  ;;  %v4189_v55 = vld [vmem:[%s6640_s13 + $0x18] sm:$0xf0]  ;;  %v4235_v57 = vld [vmem:[%s6640_s13 + $0x18c] sm:$0xf]  ;;  %v3403_v36 = vld [vmem:[%s6640_s13 + $0x1a4] sm:$0xf0] }
 0x15f   :  { %v383_v43 = vpack.c.bf16 %v381_v39, %v381_v39  ;;  %v3206_v35 = vor.u32 %v4189_v55, %v3205_v40  ;;  %v3406_v39 = vor.u32 %v4235_v57, %v3403_v36  ;;  %v4371_v40 = vld [vmem:[%s6640_s13 + $0x5c8] sm:$0xf0] }
 0x160   :  { %786 = vmatmul.bf16.vlgmr.msrb.gmra.mxu0 %v382_v38  ;;  %812 = vmatmul.bf16.vlgmr.msrb.gmra.mxu2 %v382_v38 }
 0x161   :  { %799 = vmatmul.bf16.vlgmr.msrb.gmra.mxu1 %v383_v43  ;;  %825 = vmatmul.bf16.vlgmr.msrb.gmra.mxu3 %v383_v43 }
 0x162   :  { %2470 = vmatpush.bf16.msrb.mxu0 %v3402_v42  ;;  %2483 = vmatpush.bf16.msrb.mxu1 %v3626_v48  ;;  %v3457_v42 = vld [vmem:[%s6640_s13 + $0x1f8] sm:$0xf]  ;;  %v3737_v48 = vld [vmem:[%s6640_s13 + $0x428] sm:$0xf] }
 0x163   :  { %2496 = vmatpush.bf16.msrb.mxu2 %v3850_v4  ;;  %2509 = vmatpush.bf16.msrb.mxu3 %v4074_v20  ;;  %v3738_v50 = vor.u32 %v4322_v49, %v3737_v48  ;;  %v3709_v4 = vld [vmem:[%s6640_s13 + $0x3f0] sm:$0xf]  ;;  %v3602_v20 = vor.u32 %v4284_v16, %v3599_v17 }
 0x164   :  { %v3710_v6 = vor.u32 %v4315_v5, %v3709_v4  ;;  %v4200_v5 = vld [vmem:[%s6640_s13 + $0x74] sm:$0xf] }
 0x166   :  { %2471 = vmatpush.bf16.msrb.mxu0 %v3374_v46  ;;  %2484 = vmatpush.bf16.msrb.mxu1 %v3598_v54  ;;  %v4392_v46 = vld [vmem:[%s6640_s13 + $0x670] sm:$0xf0]  ;;  %v3429_v54 = vld [vmem:[%s6640_s13 + $0x1c0] sm:$0xf] }
 0x167   :  { %2497 = vmatpush.bf16.msrb.mxu2 %v3822_v14  ;;  %2510 = vmatpush.bf16.msrb.mxu3 %v4046_v34  ;;  %v4018_v8 = vor.u32 %v4392_v46, %v4017_v44  ;;  %v3430_v60 = vor.u32 %v4245_v56, %v3429_v54  ;;  %v4378_v14 = vld [vmem:[%s6640_s13 + $0x600] sm:$0xf0]  ;;  %v3933_v34 = vld [vmem:[%s6640_s13 + $0x5b0] sm:$0xf]  ;;  %v4301_v44 = vld [vmem:[%s6640_s13 + $0x398] sm:$0xf0] }
 0x168   :  { %v3962_v15 = vor.u32 %v4378_v14, %v3961_v13  ;;  %v4207_v46 = vld [vmem:[%s6640_s13 + $0xac] sm:$0xf]  ;;  %v3905_v56 = vld [vmem:[%s6640_s13 + $0x578] sm:$0xf]  ;;  %v4340_v14 = vld [vmem:[%s6640_s13 + $0x4d4] sm:$0xf] }
 0x16a   :  { %2472 = vmatpush.bf16.msrb.mxu0 %v3346_v51  ;;  %2485 = vmatpush.bf16.msrb.mxu1 %v3570_v62  ;;  %v4228_v51 = vld [vmem:[%s6640_s13 + $0x154] sm:$0xf]  ;;  %v4291_v62 = vld [vmem:[%s6640_s13 + $0x34c] sm:$0xf] }
 0x16b   :  { %2498 = vmatpush.bf16.msrb.mxu2 %v3794_v21  ;;  %2511 = vmatpush.bf16.msrb.mxu3 %v4018_v8  ;;  %v3378_v53 = vor.u32 %v4228_v51, %v3375_v52  ;;  %v3630_v3 = vor.u32 %v4291_v62, %v3627_v63  ;;  %v3319_v21 = vld [vmem:[%s6640_s13 + $0xfc] sm:$0xf0]  ;;  %v4347_v8 = vld [vmem:[%s6640_s13 + $0x50c] sm:$0xf]  ;;  %v3851_v51 = vld [vmem:[%s6640_s13 + $0x524] sm:$0xf0] }
 0x16c   :  { %v3322_v33 = vor.u32 %v4214_v27, %v3319_v21  ;;  %v3854_v54 = vor.u32 %v4347_v8, %v3851_v51  ;;  %v452_v63 = vperm.slane %v5201_v30, 2 }
 0x16e   :  { %2473 = vmatpush.bf16.msrb.mxu0 %v3318_v59  ;;  %2486 = vmatpush.bf16.msrb.mxu1 %v3542_v7  ;;  %v4221_v7 = vld [vmem:[%s6640_s13 + $0x11c] sm:$0xf] }
 0x170   :  { %838 = vmatmul.bf16.vlgmr.msra.gmra.mxu0 %v382_v38  ;;  %864 = vmatmul.bf16.vlgmr.msra.gmra.mxu2 %v382_v38  ;;  %v3766_v38 = vor.u32 %v4329_v41, %v3765_v25  ;;  %v3934_v25 = vor.u32 %v4371_v40, %v3933_v34  ;;  %v3571_v41 = vld [vmem:[%s6640_s13 + $0x2f4] sm:$0xf0]  ;;  %v4193_v40 = vld [vmem:[%s6640_s13 + $0x3c] sm:$0xf] }
 0x171   :  { %851 = vmatmul.bf16.vlgmr.msra.gmra.mxu1 %v383_v43  ;;  %877 = vmatmul.bf16.vlgmr.msra.gmra.mxu3 %v383_v43  ;;  %v4252_v43 = vld [vmem:[%s6640_s13 + $0x210] sm:$0xf0] }
 0x172   :  { %2474 = vmatpush.bf16.msrb.mxu0 %v3290_v2  ;;  %2487 = vmatpush.bf16.msrb.mxu1 %v3514_v18  ;;  %v3458_v45 = vor.u32 %v4252_v43, %v3457_v42  ;;  %v3990_v2 = vor.u32 %v4385_v61, %v3989_v58  ;;  %v3653_v43 = vld [vmem:[%s6640_s13 + $0x380] sm:$0xf]  ;;  %v4364_v58 = vld [vmem:[%s6640_s13 + $0x590] sm:$0xf0] }
 0x173   :  { %2499 = vmatpush.bf16.msrb.mxu2 %v3766_v38 }
 0x174   :  { %2512 = vmatpush.bf16.msrb.mxu3 %v3990_v2 }
 0x176   :  { %2475 = vmatpush.bf16.msrb.mxu0 %v3262_v12  ;;  %2488 = vmatpush.bf16.msrb.mxu1 %v3486_v31  ;;  %v3350_v12 = vor.u32 %v4221_v7, %v3347_v9 }
 0x177   :  { %2500 = vmatpush.bf16.msrb.mxu2 %v3738_v50 }
 0x178   :  { %2513 = vmatpush.bf16.msrb.mxu3 %v3962_v15  ;;  %v3823_v15 = vld [vmem:[%s6640_s13 + $0x4ec] sm:$0xf0] }
 0x17a   :  { %2476 = vmatpush.bf16.msrb.mxu0 %v3234_v26  ;;  %2489 = vmatpush.bf16.msrb.mxu1 %v3458_v45  ;;  %v3682_v26 = vor.u32 %v4308_v23, %v3681_v22  ;;  %v3654_v45 = vor.u32 %v4301_v44, %v3653_v43  ;;  %v4263_v22 = vld [vmem:[%s6640_s13 + $0x26c] sm:$0xf] }
 0x17b   :  { %2501 = vmatpush.bf16.msrb.mxu2 %v3710_v6  ;;  %v3263_v6 = vld [vmem:[%s6640_s13 + $0x8c] sm:$0xf0] }
 0x17c   :  { %2514 = vmatpush.bf16.msrb.mxu3 %v3934_v25  ;;  %v3266_v13 = vor.u32 %v4200_v5, %v3263_v6  ;;  %v4326_v6 = vld [vmem:[%s6640_s13 + $0x464] sm:$0xf] }
 0x17e   :  { %2477 = vmatpush.bf16.msrb.mxu0 %v3206_v35  ;;  %2490 = vmatpush.bf16.msrb.mxu1 %v3430_v60  ;;  %v4277_v35 = vld [vmem:[%s6640_s13 + $0x2dc] sm:$0xf] }
 0x17f   :  { %2502 = vmatpush.bf16.msrb.mxu2 %v3682_v26  ;;  %v3574_v42 = vor.u32 %v4277_v35, %v3571_v41 }
 0x182   :  { %2522 = vmatpush.bf16.msra.mxu0 %v3406_v39  ;;  %2535 = vmatpush.bf16.msra.mxu1 %v3630_v3  ;;  %v3906_v3 = vor.u32 %v4364_v58, %v3905_v56  ;;  %v4186_v58 = vld [vmem:[%s6640_s13 + $0x4] sm:$0xf] }
 0x183   :  { %2503 = vmatpush.bf16.msrb.mxu2 %v3654_v45  ;;  %v4256_v45 = vld [vmem:[%s6640_s13 + $0x234] sm:$0xf] }
 0x184   :  { %2515 = vmatpush.bf16.msrb.mxu3 %v3906_v3 }
 0x186   :  { %2523 = vmatpush.bf16.msra.mxu0 %v3378_v53  ;;  %2536 = vmatpush.bf16.msra.mxu1 %v3602_v20  ;;  %v4357_v20 = vld [vmem:[%s6640_s13 + $0x558] sm:$0xf0] }
 0x187   :  { %2548 = vmatpush.bf16.msra.mxu2 %v3854_v54 }
 0x18a   :  { %2524 = vmatpush.bf16.msra.mxu0 %v3350_v12  ;;  %2537 = vmatpush.bf16.msra.mxu1 %v3574_v42 }
 0x18e   :  { %2525 = vmatpush.bf16.msra.mxu0 %v3322_v33 }
 0x1dd   :  { %v787_v59 = vpop.f32.mrf.mxu0 }
 0x1de   :  { %v788_v0 = vadd.f32 %v787_v59, %v450_v47  ;;  %v800_v1 = vpop.f32.mrf.mxu1  ;;  %v3291_v47 = vld [vmem:[%s6640_s13 + $0xc4] sm:$0xf0]  ;;  %v4270_v59 = vld [vmem:[%s6640_s13 + $0x2a4] sm:$0xf] }
 0x1df   :  { %v3294_v53 = vor.u32 %v4207_v46, %v3291_v47 }
 0x1e0   :  { %v5282_v10 = vadd.f32 %v800_v1, %v788_v0  ;;  %v3543_v0 = vld [vmem:[%s6640_s13 + $0x2bc] sm:$0xf0] }
 0x1e1   :  { %2526 = vmatpush.bf16.msra.mxu0 %v3294_v53  ;;  %v3546_v4 = vor.u32 %v4270_v59, %v3543_v0  ;;  %v3207_v59 = vld [vmem:[%s6640_s13 + $0x1c] sm:$0xf0] }
 0x1e2   :  { %v884_v18 = vrot.slane %v5282_v10, 4  ;;  %v912_v19 = vmul.f32 %v5282_v10, %v5282_v10  ;;  %v3210_v5 = vor.u32 %v4186_v58, %v3207_v59  ;;  %v4305_v59 = vld [vmem:[%s6640_s13 + $0x3bc] sm:$0xf] }
 0x1e3   :  { %v813_v24 = vpop.f32.mrf.mxu2  ;;  %2538 = vmatpush.bf16.msra.mxu1 %v3546_v4 }
 0x1e4   :  { %v885_v28 = vadd.f32 %v884_v18, %v5282_v10  ;;  %v916_v29 = vrot.slane %v912_v19, 4  ;;  %v814_v31 = vadd.f32 %v813_v24, %v451_v11  ;;  %v826_v32 = vpop.f32.mrf.mxu3  ;;  %v3826_v18 = vor.u32 %v4340_v14, %v3823_v15  ;;  %v4389_v14 = vld [vmem:[%s6640_s13 + $0x65c] sm:$0xf] }
 0x1e5   :  { %v789_v55 = vpop.f32.mrf.mxu0  ;;  %2527 = vmatpush.bf16.msra.mxu0 %v3266_v13  ;;  %v3459_v13 = vld [vmem:[%s6640_s13 + $0x214] sm:$0xf0] }
 0x1e6   :  { %v886_v57 = vrot.slane %v885_v28, 2  ;;  %v917_v36 = vadd.f32 %v916_v29, %v912_v19  ;;  %v5325_v38 = vadd.f32 %v826_v32, %v814_v31  ;;  %v802_v39 = vpop.f32.mrf.mxu1  ;;  %v3877_v19 = vld [vmem:[%s6640_s13 + $0x540] sm:$0xf]  ;;  %v4403_v29 = vld [vmem:[%s6640_s13 + $0x6cc] sm:$0xf]  ;;  %2549 = vmatpush.bf16.msra.mxu2 %v3826_v18 }
 0x1e7   :  { %v4075_v31 = vld [vmem:[%s6640_s13 + $0x6e4] sm:$0xf0]  ;;  %v3878_v33 = vor.u32 %v4357_v20, %v3877_v19  ;;  %v3235_v55 = vld [vmem:[%s6640_s13 + $0x54] sm:$0xf0]  ;;  %v4319_v20 = vld [vmem:[%s6640_s13 + $0x42c] sm:$0xf] }
 0x1e8   :  { %v887_v48 = vadd.f32 %v886_v57, %v885_v28  ;;  %v918_v49 = vrot.slane %v917_v36, 2  ;;  %v890_v50 = vrot.slane %v5325_v38, 4  ;;  %v913_v52 = vmul.f32 %v5325_v38, %v5325_v38  ;;  %v3515_v28 = vld [vmem:[%s6640_s13 + $0x284] sm:$0xf0]  ;;  %v3795_v39 = vld [vmem:[%s6640_s13 + $0x4b4] sm:$0xf0] }
 0x1e9   :  { %v3518_v34 = vor.u32 %v4263_v22, %v3515_v28  ;;  %v453_v57 = vperm.slane %v5201_v30, 3  ;;  %2516 = vmatpush.bf16.msrb.mxu3 %v3878_v33  ;;  %v4078_v44 = vor.u32 %v4403_v29, %v4075_v31  ;;  %v3487_v30 = vld [vmem:[%s6640_s13 + $0x24c] sm:$0xf0]  ;;  %v3238_v8 = vor.u32 %v4193_v40, %v3235_v55  ;;  %v4019_v19 = vld [vmem:[%s6640_s13 + $0x674] sm:$0xf0] }
 0x1ea   :  { %v888_v60 = vrot.slane %v887_v48, 1  ;;  %v919_v61 = vadd.f32 %v918_v49, %v917_v36  ;;  %v891_v62 = vadd.f32 %v890_v50, %v5325_v38  ;;  %v922_v1 = vrot.slane %v913_v52, 4  ;;  %v4333_v36 = vld [vmem:[%s6640_s13 + $0x49c] sm:$0xf]  ;;  %v4396_v49 = vld [vmem:[%s6640_s13 + $0x694] sm:$0xf] }
 0x1eb   :  { %v815_v2 = vpop.f32.mrf.mxu2  ;;  %2539 = vmatpush.bf16.msra.mxu1 %v3518_v34  ;;  %v4047_v50 = vld [vmem:[%s6640_s13 + $0x6ac] sm:$0xf0]  ;;  %v3490_v56 = vor.u32 %v4256_v45, %v3487_v30  ;;  %2528 = vmatpush.bf16.msra.mxu0 %v3238_v8  ;;  %v3431_v33 = vld [vmem:[%s6640_s13 + $0x1dc] sm:$0xf0]  ;;  %v4382_v55 = vld [vmem:[%s6640_s13 + $0x624] sm:$0xf] }
 0x1ec   :  { %v889_v7 = vadd.f32 %v888_v60, %v887_v48  ;;  %v920_v9 = vrot.slane %v919_v61, 1  ;;  %v892_v11 = vrot.slane %v891_v62, 2  ;;  %v828_v12 = vpop.f32.mrf.mxu3  ;;  %v923_v16 = vadd.f32 %v922_v1, %v913_v52 }
 0x1ed   :  { %v839_v17 = vpop.f32.mrf.mxu0  ;;  %v3798_v48 = vor.u32 %v4333_v36, %v3795_v39  ;;  %2561 = vmatpush.bf16.msra.mxu3 %v4078_v44  ;;  %v4050_v0 = vor.u32 %v4396_v49, %v4047_v50  ;;  %v4249_v12 = vld [vmem:[%s6640_s13 + $0x1fc] sm:$0xf] }
 0x1ee   :  { %v5384_v23 = vmul.f32 %v889_v7, %v4918_v37  ;;  %v921_v24 = vadd.f32 %v920_v9, %v919_v61  ;;  %v893_v26 = vadd.f32 %v892_v11, %v891_v62  ;;  %v840_v27 = vadd.f32 %v839_v17, %v452_v63  ;;  %v852_v21 = vpop.f32.mrf.mxu1  ;;  %v3767_v7 = vld [vmem:[%s6640_s13 + $0x47c] sm:$0xf0] }
 0x1ef   :  { %v924_v32 = vrot.slane %v923_v16, 2  ;;  %2550 = vmatpush.bf16.msra.mxu2 %v3798_v48  ;;  %2540 = vmatpush.bf16.msra.mxu1 %v3490_v56  ;;  %v3770_v22 = vor.u32 %v4326_v6, %v3767_v7  ;;  %v3711_v48 = vld [vmem:[%s6640_s13 + $0x40c] sm:$0xf0] }
 0x1f0   :  { %v940_v25 = vmul.f32 %v921_v24, %v4918_v37  ;;  %v944_v35 = vmul.f32 %v5384_v23, %v5384_v23  ;;  %v894_v41 = vrot.slane %v893_v26, 1  ;;  %v5411_v43 = vadd.f32 %v852_v21, %v840_v27  ;;  %2529 = vmatpush.bf16.msra.mxu0 %v3210_v5  ;;  %v3739_v27 = vld [vmem:[%s6640_s13 + $0x444] sm:$0xf0] }
 0x1f1   :  { %v925_v42 = vadd.f32 %v924_v32, %v923_v16  ;;  %2562 = vmatpush.bf16.msra.mxu3 %v4050_v0  ;;  %v3462_v24 = vor.u32 %v4249_v12, %v3459_v13  ;;  %v4242_v32 = vld [vmem:[%s6640_s13 + $0x1c4] sm:$0xf]  ;;  %v3742_v40 = vor.u32 %v4319_v20, %v3739_v27  ;;  %v4368_v12 = vld [vmem:[%s6640_s13 + $0x5b4] sm:$0xf]  ;;  %v3935_v13 = vld [vmem:[%s6640_s13 + $0x5cc] sm:$0xf0] }
 0x1f2   :  { %v948_v46 = vsub.f32 %v940_v25, %v944_v35  ;;  %v895_v47 = vadd.f32 %v894_v41, %v893_v26  ;;  %v896_v52 = vrot.slane %v5411_v43, 4  ;;  %v914_v53 = vmul.f32 %v5411_v43, %v5411_v43  ;;  %v3991_v25 = vld [vmem:[%s6640_s13 + $0x63c] sm:$0xf0] }
 0x1f3   :  { %v926_v51 = vrot.slane %v925_v42, 1  ;;  %v865_v54 = vpop.f32.mrf.mxu2  ;;  %v4022_v26 = vor.u32 %v4389_v14, %v4019_v19  ;;  %2551 = vmatpush.bf16.msra.mxu2 %v3770_v22  ;;  %2541 = vmatpush.bf16.msra.mxu1 %v3462_v24  ;;  %v3434_v30 = vor.u32 %v4242_v32, %v3431_v33  ;;  %v4298_v24 = vld [vmem:[%s6640_s13 + $0x384] sm:$0xf]  ;;  %v5541_v27 = vld [vmem:[%s6643_s12] sm:$0xf] }
 0x1f4   :  { %v5434_v60 = vadd.f32 0.8, %v948_v46  ;;  %v5437_v61 = vmul.f32 %v895_v47, %v4918_v37  ;;  %v866_v62 = vadd.f32 %v865_v54, %v453_v57  ;;  %v878_v63 = vpop.f32.mrf.mxu3  ;;  %v897_v2 = vadd.f32 %v896_v52, %v5411_v43  ;;  %v4312_v47 = vld [vmem:[%s6640_s13 + $0x3f4] sm:$0xf]  ;;  %v3963_v54 = vld [vmem:[%s6640_s13 + $0x604] sm:$0xf0] }
 0x1f5   :  { %v927_v1 = vadd.f32 %v926_v51, %v925_v42  ;;  %v928_v3 = vrot.slane %v914_v53, 4  ;;  %v841_v4 = vpop.f32.mrf.mxu0  ;;  %2563 = vmatpush.bf16.msra.mxu3 %v4022_v26  ;;  %v3994_v46 = vor.u32 %v4382_v55, %v3991_v25  ;;  %v3714_v58 = vor.u32 %v4312_v47, %v3711_v48  ;;  %v3655_v26 = vld [vmem:[%s6640_s13 + $0x39c] sm:$0xf0]  ;;  %v4361_v25 = vld [vmem:[%s6640_s13 + $0x57c] sm:$0xf] }
 0x1f6   :  { %4418 = vrsqrt.f32 %v5434_v60  ;;  %v945_v9 = vmul.f32 %v5437_v61, %v5437_v61  ;;  %v854_v11 = vpop.f32.mrf.mxu1  ;;  %v898_v16 = vrot.slane %v897_v2, 2  ;;  %v5459_v18 = vadd.f32 %v878_v63, %v866_v62 }
 0x1f7   :  { %v941_v15 = vmul.f32 %v927_v1, %v4918_v37  ;;  %v929_v17 = vadd.f32 %v928_v3, %v914_v53  ;;  %2552 = vmatpush.bf16.msra.mxu2 %v3742_v40  ;;  %2542 = vmatpush.bf16.msra.mxu1 %v3434_v30  ;;  %v4375_v53 = vld [vmem:[%s6640_s13 + $0x5ec] sm:$0xf]  ;;  %v5518_v3 = vld [vmem:[%s6642_s11] sm:$0xf]  ;;  %vm966_vm15 = vweird.f32 %v5434_v60 }
 0x1f8   :  { %v899_v28 = vadd.f32 %v898_v16, %v897_v2  ;;  %v902_v31 = vrot.slane %v5459_v18, 4  ;;  %v915_v34 = vmul.f32 %v5459_v18, %v5459_v18  ;;  %v3683_v2 = vld [vmem:[%s6640_s13 + $0x3d4] sm:$0xf0]  ;;  %v3966_v5 = vor.u32 %v4375_v53, %v3963_v54  ;;  %v4239_v53 = vld [vmem:[%s6640_s13 + $0x1a8] sm:$0xf0] }
 0x1f9   :  { %v949_v21 = vsub.f32 %v941_v15, %v945_v9  ;;  %v930_v29 = vrot.slane %v929_v17, 2  ;;  %2564 = vmatpush.bf16.msra.mxu3 %v3994_v46  ;;  %v3686_v11 = vor.u32 %v4305_v59, %v3683_v2  ;;  %v3879_v46 = vld [vmem:[%s6640_s13 + $0x55c] sm:$0xf0]  ;;  %v1006_v47 = vperm.slane %v5518_v3, 1 }
 0x1fa   :  { %v900_v41 = vrot.slane %v899_v28, 1  ;;  %v903_v36 = vadd.f32 %v902_v31, %v5459_v18  ;;  %v934_v44 = vrot.slane %v915_v34, 4  ;;  %v952_v31 = vsub.f32 %v5282_v10, %v5384_v23  ;;  %v3907_v10 = vld [vmem:[%s6640_s13 + $0x594] sm:$0xf0] }
 0x1fb   :  { %v5485_v35 = vadd.f32 0.8, %v949_v21  ;;  %v931_v57 = vadd.f32 %v930_v29, %v929_v17  ;;  %v867_v39 = vpop.f32.mrf.mxu2  ;;  %2553 = vmatpush.bf16.msra.mxu2 %v3714_v58  ;;  %v1005_v17 = vperm.slane %v5518_v3, 0  ;;  %v3938_v29 = vor.u32 %v4368_v12, %v3935_v13  ;;  %v4295_v12 = vld [vmem:[%s6640_s13 + $0x368] sm:$0xf0] }
 0x1fc   :  { %v5488_v42 = vpop.eup %4418  ;;  %v880_v45 = vpop.f32.mrf.mxu3  ;;  %v901_v49 = vadd.f32 %v900_v41, %v899_v28  ;;  %v904_v51 = vrot.slane %v903_v36, 2  ;;  %v935_v52 = vadd.f32 %v934_v44, %v915_v34  ;;  %v1018_v41 = vperm.slane %v5541_v27, 0  ;;  %v3353_v13 = vld [vmem:[%s6640_s13 + $0x120] sm:$0xf] }
 0x1fd   :  { %v961_v8 = vmul.f32 %v5488_v42, %v5434_v60  ;;  %4420 = vrsqrt.f32 %v5485_v35  ;;  %v932_v50 = vrot.slane %v931_v57, 1  ;;  %vm967_vm14 = vweird.f32 %v5488_v42  ;;  %2565 = vmatpush.bf16.msra.mxu3 %v3966_v5  ;;  %v4232_v5 = vld [vmem:[%s6640_s13 + $0x170] sm:$0xf0] }
 0x1fe   :  { %v5510_v62 = vmul.f32 %v901_v49, %v4918_v37  ;;  %v905_v0 = vadd.f32 %v904_v51, %v903_v36  ;;  %v936_v1 = vrot.slane %v935_v52, 2  ;;  %vm968_vm0 = vmor %vm966_vm15, %vm967_vm14  ;;  %v3658_v60 = vor.u32 %v4298_v24, %v3655_v26 }
 0x1ff   :  { %v962_v56 = vmul.f32 %v5488_v42, %v961_v8  ;;  %v933_v63 = vadd.f32 %v932_v50, %v931_v57  ;;  %2554 = vmatpush.bf16.msra.mxu2 %v3686_v11  ;;  %v3910_v30 = vor.u32 %v4361_v25, %v3907_v10  ;;  %vm976_vm2 = vweird.f32 %v5485_v35  ;;  %v3633_v11 = vld [vmem:[%s6640_s13 + $0x350] sm:$0xf] }
 0x200   :  { %v946_v7 = vmul.f32 %v5510_v62, %v5510_v62  ;;  %v906_v9 = vrot.slane %v905_v0, 1  ;;  %v937_v16 = vadd.f32 %v936_v1, %v935_v52  ;;  %v953_v50 = vsub.f32 %v5325_v38, %v5437_v61  ;;  %v3409_v52 = vld [vmem:[%s6640_s13 + $0x190] sm:$0xf] }
 0x201   :  { %v963_v4 = vmul.f32 0.5, %v962_v56  ;;  %v942_v6 = vmul.f32 %v933_v63, %v4918_v37  ;;  %2566 = vmatpush.bf16.msra.mxu3 %v3938_v29  ;;  %v1019_v59 = vperm.slane %v5541_v27, 1  ;;  %v3410_v63 = vor.u32 %v4239_v53, %v3409_v52  ;;  %v3269_v53 = vld [vmem:[%s6640_s13 + $0x78] sm:$0xf] }
 0x202   :  { %v907_v22 = vadd.f32 %v906_v9, %v905_v0  ;;  %v938_v28 = vrot.slane %v937_v16, 1  ;;  %v3634_v26 = vor.u32 %v4295_v12, %v3633_v11  ;;  %v4407_v11 = vld [vmem:[%s6640_s13 + $0x6e8] sm:$0xf0]  ;;  %v3801_v12 = vld [vmem:[%s6640_s13 + $0x4a0] sm:$0xf]  ;;  %vm2847_vm14 = vcmask 130048  }
 0x203   :  { %v4421_v14 = vpop.eup %4420  ;;  %v964_v15 = vsub.f32 1.5, %v963_v4  ;;  %v950_v20 = vsub.f32 %v942_v6, %v946_v7  ;;  %2555 = vmatpush.bf16.msra.mxu2 %v3658_v60  ;;  %v3381_v4 = vld [vmem:[%s6640_s13 + $0x158] sm:$0xf]  ;;  %v1020_v60 = vperm.slane %v5541_v27, 2 }
 0x204   :  { %v971_v19 = vmul.f32 %v4421_v14, %v5485_v35  ;;  %v5552_v34 = vmul.f32 %v907_v22, %v4918_v37  ;;  %v939_v55 = vadd.f32 %v938_v28, %v937_v16  ;;  %vm977_vm1 = vweird.f32 %v4421_v14 }
 0x205   :  { %v965_v21 = vmul.f32 %v5488_v42, %v964_v15  ;;  %v5549_v33 = vadd.f32 0.8, %v950_v20  ;;  %2567 = vmatpush.bf16.msra.mxu3 %v3910_v30  ;;  %vm978_vm3 = vmor %vm976_vm2, %vm977_vm1  ;;  %v3382_v9 = vor.u32 %v4232_v5, %v3381_v4  ;;  %v954_v28 = vsub.f32 %v5411_v43, %v5510_v62  ;;  %v4218_v43 = vld [vmem:[%s6640_s13 + $0x100] sm:$0xf0]  ;;  %v3241_v5 = vld [vmem:[%s6640_s13 + $0x40] sm:$0xf] }
 0x206   :  { %v972_v32 = vmul.f32 %v4421_v14, %v971_v19  ;;  %v943_v36 = vmul.f32 %v939_v55, %v4918_v37  ;;  %v947_v39 = vmul.f32 %v5552_v34, %v5552_v34  ;;  %v1007_v19 = vperm.slane %v5518_v3, 2 }
 0x207   :  { %v969_v40 = vsel %vm968_vm0, %v5488_v42, %v965_v21  ;;  %4422 = vrsqrt.f32 %v5549_v33  ;;  %v4354_v42 = vld [vmem:[%s6640_s13 + $0x544] sm:$0xf]  ;;  %vm986_vm7 = vweird.f32 %v5549_v33 }
 0x208   :  { %v1000_v23 = vmul.f32 %v969_v40, %v952_v31  ;;  %v973_v57 = vmul.f32 0.5, %v972_v32  ;;  %v951_v8 = vsub.f32 %v943_v36, %v947_v39  ;;  %v3882_v49 = vor.u32 %v4354_v42, %v3879_v46  ;;  %v3605_v32 = vld [vmem:[%s6640_s13 + $0x318] sm:$0xf]  ;;  %v4288_v40 = vld [vmem:[%s6640_s13 + $0x330] sm:$0xf0] }
 0x209   :  { %v3606_v10 = vor.u32 %v4288_v40, %v3605_v32  ;;  %v3577_v36 = vld [vmem:[%s6640_s13 + $0x2e0] sm:$0xf]  ;;  %v4281_v39 = vld [vmem:[%s6640_s13 + $0x2f8] sm:$0xf0]  ;;  %v3297_v42 = vld [vmem:[%s6640_s13 + $0xb0] sm:$0xf] }
 0x20a   :  { %v1013_v44 = vmul.f32 %v1005_v17, %v1000_v23  ;;  %v974_v45 = vsub.f32 1.5, %v973_v57  ;;  %v5576_v51 = vadd.f32 0.8, %v951_v8  ;;  %2568 = vmatpush.bf16.msra.mxu3 %v3882_v49  ;;  %v4225_v17 = vld [vmem:[%s6640_s13 + $0x138] sm:$0xf0]  ;;  %v1008_v8 = vperm.slane %v5518_v3, 3 }
 0x20b   :  { %v3354_v31 = vor.u32 %v4225_v17, %v3353_v13  ;;  %v3857_v46 = vld [vmem:[%s6640_s13 + $0x510] sm:$0xf]  ;;  %v3549_v49 = vld [vmem:[%s6640_s13 + $0x2a8] sm:$0xf]  ;;  %v3493_v17 = vld [vmem:[%s6640_s13 + $0x238] sm:$0xf] }
 0x20c   :  { %v1026_v37 = vadd.f32 %v1018_v41, %v1013_v44  ;;  %v975_v48 = vmul.f32 %v4421_v14, %v974_v45  ;;  %4424 = vrsqrt.f32 %v5576_v51  ;;  %v4211_v44 = vld [vmem:[%s6640_s13 + $0xc8] sm:$0xf0]  ;;  %vm996_vm10 = vweird.f32 %v5576_v51  ;;  %v4400_v32 = vld [vmem:[%s6640_s13 + $0x6b0] sm:$0xf0] }
 0x20d   :  { %v4423_v54 = vpop.eup %4422  ;;  %v3298_v52 = vor.u32 %v4211_v44, %v3297_v42  ;;  %v4236_v40 = vld [vmem:[%s6640_s13 + $0x194] sm:$0xf]  ;;  %v3745_v42 = vld [vmem:[%s6640_s13 + $0x430] sm:$0xf] }
 0x20e   :  { %vm1030_vm4 = vcmp.gt.f32.partialorder %v1026_v37, 0.0  ;;  %v1034_v56 = vmul.f32 0.2, %v1026_v37  ;;  %v979_v35 = vsel %vm978_vm3, %v4421_v14, %v975_v48  ;;  %v981_v38 = vmul.f32 %v4423_v54, %v5549_v33  ;;  %v3325_v33 = vld [vmem:[%s6640_s13 + $0xe8] sm:$0xf] }
 0x20f   :  { %v1001_v58 = vmul.f32 %v979_v35, %v953_v50  ;;  %vm987_vm6 = vweird.f32 %v4423_v54  ;;  %v3326_v57 = vor.u32 %v4218_v43, %v3325_v33  ;;  %v4351_v48 = vld [vmem:[%s6640_s13 + $0x528] sm:$0xf0]  ;;  %v3773_v43 = vld [vmem:[%s6640_s13 + $0x468] sm:$0xf] }
 0x210   :  { %v1038_v61 = vsel %vm1030_vm4, %v1026_v37, %v1034_v56  ;;  %v982_v2 = vmul.f32 %v4423_v54, %v981_v38  ;;  %vm988_vm8 = vmor %vm986_vm7, %vm987_vm6  ;;  %v3578_v37 = vor.u32 %v4281_v39, %v3577_v36  ;;  %v3858_v35 = vor.u32 %v4351_v48, %v3857_v46  ;;  %v4025_v36 = vld [vmem:[%s6640_s13 + $0x660] sm:$0xf]  ;;  %v4393_v39 = vld [vmem:[%s6640_s13 + $0x678] sm:$0xf0] }
 0x211   :  { %v5587_v0 = vpack.c.bf16 %v1038_v61, %v1038_v61  ;;  %v1014_v1 = vmul.f32 %v1006_v47, %v1001_v58  ;;  %v955_v47 = vsub.f32 %v5459_v18, %v5552_v34  ;;  %v4274_v18 = vld [vmem:[%s6640_s13 + $0x2c0] sm:$0xf0]  ;;  %v1021_v34 = vperm.slane %v5541_v27, 3  ;;  %v3829_v27 = vld [vmem:[%s6640_s13 + $0x4d8] sm:$0xf] }
 0x212   :  { %v983_v7 = vmul.f32 0.5, %v982_v2  ;;  %v4425_v14 = vpop.eup %4424  ;;  %v3550_v38 = vor.u32 %v4274_v18, %v3549_v49  ;;  %v4344_v61 = vld [vmem:[%s6640_s13 + $0x4f0] sm:$0xf0]  ;;  %v4267_v2 = vld [vmem:[%s6640_s13 + $0x288] sm:$0xf0] }
 0x213   :  { %v1027_v6 = vadd.f32 %v1019_v59, %v1014_v1  ;;  %2478 = vmatmul.bf16.vlgmr.msrb.gmra.mxu0 %v5587_v0  ;;  %v991_v20 = vmul.f32 %v4425_v14, %v5576_v51  ;;  %vm997_vm9 = vweird.f32 %v4425_v14  ;;  %v3521_v1 = vld [vmem:[%s6640_s13 + $0x270] sm:$0xf]  ;;  %v3383_v46 = vld [vmem:[%s6640_s13 + $0x174] sm:$0xf0]  ;;  %v4292_v48 = vld [vmem:[%s6640_s13 + $0x354] sm:$0xf] }
 0x214   :  { %2574 = vmatpush.bf16.msrb.mxu0 %v3410_v63  ;;  %v984_v16 = vsub.f32 1.5, %v983_v7  ;;  %vm998_vm11 = vmor %vm996_vm10, %vm997_vm9  ;;  %v3830_v7 = vor.u32 %v4344_v61, %v3829_v27  ;;  %v3635_v49 = vld [vmem:[%s6640_s13 + $0x36c] sm:$0xf0]  ;;  %v4386_v18 = vld [vmem:[%s6640_s13 + $0x640] sm:$0xf0] }
 0x215   :  { %vm1031_vm5 = vcmp.gt.f32.partialorder %v1027_v6, 0.0  ;;  %v1035_v15 = vmul.f32 0.2, %v1027_v6  ;;  %v992_v29 = vmul.f32 %v4425_v14, %v991_v20  ;;  %v3607_v27 = vld [vmem:[%s6640_s13 + $0x334] sm:$0xf0] }
 0x216   :  { %v985_v24 = vmul.f32 %v4423_v54, %v984_v16 }
 0x217   :  { %v1039_v22 = vsel %vm1031_vm5, %v1027_v6, %v1035_v15  ;;  %v993_v25 = vmul.f32 0.5, %v992_v29  ;;  %v4197_v6 = vld [vmem:[%s6640_s13 + $0x58] sm:$0xf0] }
 0x218   :  { %v5611_v21 = vpack.c.bf16 %v1039_v22, %v1039_v22  ;;  %2575 = vmatpush.bf16.msrb.mxu0 %v3382_v9  ;;  %v989_v55 = vsel %vm988_vm8, %v4423_v54, %v985_v24  ;;  %v4204_v54 = vld [vmem:[%s6640_s13 + $0x90] sm:$0xf0]  ;;  %v4081_v9 = vld [vmem:[%s6640_s13 + $0x6d0] sm:$0xf]  ;;  %v4337_v15 = vld [vmem:[%s6640_s13 + $0x4b8] sm:$0xf0]  ;;  %v3242_v16 = vor.u32 %v4197_v6, %v3241_v5 }
 0x219   :  { %v1002_v62 = vmul.f32 %v989_v55, %v954_v28  ;;  %v994_v41 = vsub.f32 1.5, %v993_v25  ;;  %v3270_v63 = vor.u32 %v4204_v54, %v3269_v53  ;;  %v4082_v22 = vor.u32 %v4407_v11, %v4081_v9  ;;  %v4053_v24 = vld [vmem:[%s6640_s13 + $0x698] sm:$0xf]  ;;  %v4190_v28 = vld [vmem:[%s6640_s13 + $0x20] sm:$0xf0] }
 0x21a   :  { %2491 = vmatmul.bf16.vlgmr.msrb.gmra.mxu1 %v5611_v21  ;;  %v3411_v55 = vld [vmem:[%s6640_s13 + $0x1ac] sm:$0xf0]  ;;  %v3465_v25 = vld [vmem:[%s6640_s13 + $0x200] sm:$0xf]  ;;  %v4316_v53 = vld [vmem:[%s6640_s13 + $0x410] sm:$0xf0] }
 0x21b   :  { %2587 = vmatpush.bf16.msrb.mxu1 %v3634_v26  ;;  %v1015_v23 = vmul.f32 %v1007_v19, %v1002_v62  ;;  %v995_v30 = vmul.f32 %v4425_v14, %v994_v41  ;;  %v4260_v19 = vld [vmem:[%s6640_s13 + $0x250] sm:$0xf0]  ;;  %v3213_v26 = vld [vmem:[%s6640_s13 + $0x8] sm:$0xf]  ;;  %v4330_v62 = vld [vmem:[%s6640_s13 + $0x480] sm:$0xf0]  ;;  %v3414_v41 = vor.u32 %v4236_v40, %v3411_v55 }
 0x21c   :  { %2576 = vmatpush.bf16.msrb.mxu0 %v3354_v31  ;;  %v3802_v31 = vor.u32 %v4337_v15, %v3801_v12  ;;  %v3494_v33 = vor.u32 %v4260_v19, %v3493_v17  ;;  %v4222_v54 = vld [vmem:[%s6640_s13 + $0x124] sm:$0xf]  ;;  %v4309_v5 = vld [vmem:[%s6640_s13 + $0x3d8] sm:$0xf0]  ;;  %v4215_v6 = vld [vmem:[%s6640_s13 + $0xec] sm:$0xf] }
 0x21d   :  { %v1028_v45 = vadd.f32 %v1020_v60, %v1015_v23  ;;  %v999_v51 = vsel %vm998_vm11, %v4425_v14, %v995_v30  ;;  %v3522_v14 = vor.u32 %v4267_v2, %v3521_v1  ;;  %v3214_v60 = vor.u32 %v4190_v28, %v3213_v26  ;;  %v4229_v30 = vld [vmem:[%s6640_s13 + $0x15c] sm:$0xf]  ;;  %v3969_v1 = vld [vmem:[%s6640_s13 + $0x5f0] sm:$0xf]  ;;  %v4379_v2 = vld [vmem:[%s6640_s13 + $0x608] sm:$0xf0] }
 0x21e   :  { %v1003_v3 = vmul.f32 %v999_v51, %v955_v47  ;;  %v4054_v23 = vor.u32 %v4400_v32, %v4053_v24  ;;  %v3437_v47 = vld [vmem:[%s6640_s13 + $0x1c8] sm:$0xf]  ;;  %v3386_v51 = vor.u32 %v4229_v30, %v3383_v46  ;;  %v3970_v11 = vor.u32 %v4379_v2, %v3969_v1  ;;  %v4278_v12 = vld [vmem:[%s6640_s13 + $0x2e4] sm:$0xf]  ;;  %v4372_v17 = vld [vmem:[%s6640_s13 + $0x5d0] sm:$0xf0] }
 0x21f   :  { %2588 = vmatpush.bf16.msrb.mxu1 %v3606_v10  ;;  %vm1032_vm12 = vcmp.gt.f32.partialorder %v1028_v45, 0.0  ;;  %v1036_v50 = vmul.f32 0.2, %v1028_v45  ;;  %v4253_v10 = vld [vmem:[%s6640_s13 + $0x218] sm:$0xf0] }
 0x220   :  { %2577 = vmatpush.bf16.msrb.mxu0 %v3326_v57  ;;  %v1016_v59 = vmul.f32 %v1008_v8, %v1003_v3  ;;  %v3774_v57 = vor.u32 %v4330_v62, %v3773_v43  ;;  %v3466_v44 = vor.u32 %v4253_v10, %v3465_v25  ;;  %v4246_v8 = vld [vmem:[%s6640_s13 + $0x1e0] sm:$0xf0]  ;;  %v3717_v3 = vld [vmem:[%s6640_s13 + $0x3f8] sm:$0xf]  ;;  %v3661_v19 = vld [vmem:[%s6640_s13 + $0x388] sm:$0xf] }
 0x221   :  { %v1040_v56 = vsel %vm1032_vm12, %v1028_v45, %v1036_v50  ;;  %v4323_v45 = vld [vmem:[%s6640_s13 + $0x448] sm:$0xf0]  ;;  %v3718_v61 = vor.u32 %v4316_v53, %v3717_v3  ;;  %v3299_v24 = vld [vmem:[%s6640_s13 + $0xcc] sm:$0xf0]  ;;  %v4348_v28 = vld [vmem:[%s6640_s13 + $0x514] sm:$0xf] }
 0x222   :  { %v5664_v58 = vpack.c.bf16 %v1040_v56, %v1040_v56  ;;  %v1029_v4 = vadd.f32 %v1021_v34, %v1016_v59  ;;  %v3746_v50 = vor.u32 %v4323_v45, %v3745_v42  ;;  %v3438_v34 = vor.u32 %v4246_v8, %v3437_v47  ;;  %v3355_v56 = vld [vmem:[%s6640_s13 + $0x13c] sm:$0xf0]  ;;  %v4271_v40 = vld [vmem:[%s6640_s13 + $0x2ac] sm:$0xf]  ;;  %v3551_v55 = vld [vmem:[%s6640_s13 + $0x2c4] sm:$0xf0] }
 0x223   :  { %2589 = vmatpush.bf16.msrb.mxu1 %v3578_v37  ;;  %2530 = vmatmul.bf16.vlgmr.msra.gmra.mxu0 %v5587_v0  ;;  %v4026_v37 = vor.u32 %v4393_v39, %v4025_v36  ;;  %v3913_v62 = vld [vmem:[%s6640_s13 + $0x580] sm:$0xf]  ;;  %v4201_v10 = vld [vmem:[%s6640_s13 + $0x7c] sm:$0xf]  ;;  %v3831_v36 = vld [vmem:[%s6640_s13 + $0x4f4] sm:$0xf0] }
 0x224   :  { %2578 = vmatpush.bf16.msrb.mxu0 %v3298_v52  ;;  %2504 = vmatmul.bf16.vlgmr.msrb.gmra.mxu2 %v5664_v58  ;;  %vm1033_vm13 = vcmp.gt.f32.partialorder %v1029_v4, 0.0  ;;  %v1037_v13 = vmul.f32 0.2, %v1029_v4  ;;  %v3997_v52 = vld [vmem:[%s6640_s13 + $0x628] sm:$0xf] }
 0x225   :  { %2600 = vmatpush.bf16.msrb.mxu2 %v3858_v35  ;;  %v3638_v35 = vor.u32 %v4292_v48, %v3635_v49  ;;  %v3998_v59 = vor.u32 %v4386_v18, %v3997_v52  ;;  %v4264_v42 = vld [vmem:[%s6640_s13 + $0x274] sm:$0xf]  ;;  %v3885_v30 = vld [vmem:[%s6640_s13 + $0x548] sm:$0xf]  ;;  %v4358_v46 = vld [vmem:[%s6640_s13 + $0x560] sm:$0xf0] }
 0x226   :  { %v1041_v20 = vsel %vm1033_vm13, %v1029_v4, %v1037_v13  ;;  %v3689_v4 = vld [vmem:[%s6640_s13 + $0x3c0] sm:$0xf]  ;;  %v4404_v47 = vld [vmem:[%s6640_s13 + $0x6d4] sm:$0xf]  ;;  %v4194_v48 = vld [vmem:[%s6640_s13 + $0x44] sm:$0xf]  ;;  %v3886_v18 = vor.u32 %v4358_v46, %v3885_v30 }
 0x227   :  { %2590 = vmatpush.bf16.msrb.mxu1 %v3550_v38  ;;  %v5713_v29 = vpack.c.bf16 %v1041_v20, %v1041_v20  ;;  %v4285_v38 = vld [vmem:[%s6640_s13 + $0x31c] sm:$0xf]  ;;  %v3579_v13 = vld [vmem:[%s6640_s13 + $0x2fc] sm:$0xf0]  ;;  %v4302_v20 = vld [vmem:[%s6640_s13 + $0x3a0] sm:$0xf0] }
 0x228   :  { %2579 = vmatpush.bf16.msrb.mxu0 %v3270_v63  ;;  %v3358_v63 = vor.u32 %v4222_v54, %v3355_v56  ;;  %v3610_v9 = vor.u32 %v4285_v38, %v3607_v27  ;;  %v3582_v26 = vor.u32 %v4278_v12, %v3579_v13  ;;  %v3243_v49 = vld [vmem:[%s6640_s13 + $0x5c] sm:$0xf0]  ;;  %v4257_v3 = vld [vmem:[%s6640_s13 + $0x23c] sm:$0xf]  ;;  %v4187_v38 = vld [vmem:[%s6640_s13 + $0xc] sm:$0xf] }
 0x229   :  { %2601 = vmatpush.bf16.msrb.mxu2 %v3830_v7  ;;  %2517 = vmatmul.bf16.vlgmr.msrb.gmra.mxu3 %v5713_v29  ;;  %v3327_v7 = vld [vmem:[%s6640_s13 + $0x104] sm:$0xf0]  ;;  %v3803_v52 = vld [vmem:[%s6640_s13 + $0x4bc] sm:$0xf0]  ;;  %v3246_v54 = vor.u32 %v4194_v48, %v3243_v49  ;;  %v4397_v56 = vld [vmem:[%s6640_s13 + $0x69c] sm:$0xf] }
 0x22a   :  { %2543 = vmatmul.bf16.vlgmr.msra.gmra.mxu1 %v5611_v21  ;;  %2613 = vmatpush.bf16.msrb.mxu3 %v4082_v22  ;;  %v3330_v15 = vor.u32 %v4215_v6, %v3327_v7  ;;  %v4208_v22 = vld [vmem:[%s6640_s13 + $0xb4] sm:$0xf]  ;;  %v3215_v27 = vld [vmem:[%s6640_s13 + $0x24] sm:$0xf0]  ;;  %v3417_v2 = vld [vmem:[%s6640_s13 + $0x198] sm:$0xf] }
 0x22b   :  { %2591 = vmatpush.bf16.msrb.mxu1 %v3522_v14  ;;  %v3690_v14 = vor.u32 %v4309_v5, %v3689_v4  ;;  %v3302_v43 = vor.u32 %v4208_v22, %v3299_v24  ;;  %v3775_v1 = vld [vmem:[%s6640_s13 + $0x484] sm:$0xf0]  ;;  %v4240_v4 = vld [vmem:[%s6640_s13 + $0x1b0] sm:$0xf0]  ;;  %v4250_v5 = vld [vmem:[%s6640_s13 + $0x204] sm:$0xf] }
 0x22c   :  { %2580 = vmatpush.bf16.msrb.mxu0 %v3242_v16  ;;  %v3941_v16 = vld [vmem:[%s6640_s13 + $0x5b8] sm:$0xf]  ;;  %v3467_v6 = vld [vmem:[%s6640_s13 + $0x21c] sm:$0xf0]  ;;  %v3418_v12 = vor.u32 %v4240_v4, %v3417_v2  ;;  %v4390_v13 = vld [vmem:[%s6640_s13 + $0x664] sm:$0xf] }
 0x22d   :  { %2602 = vmatpush.bf16.msrb.mxu2 %v3802_v31  ;;  %v3859_v31 = vld [vmem:[%s6640_s13 + $0x52c] sm:$0xf0]  ;;  %v3942_v32 = vor.u32 %v4372_v17, %v3941_v16  ;;  %v3470_v16 = vor.u32 %v4250_v5, %v3467_v6  ;;  %v4243_v22 = vld [vmem:[%s6640_s13 + $0x1cc] sm:$0xf]  ;;  %v3439_v24 = vld [vmem:[%s6640_s13 + $0x1e4] sm:$0xf0] }
 0x22e   :  { %2614 = vmatpush.bf16.msrb.mxu3 %v4054_v23  ;;  %v3862_v25 = vor.u32 %v4348_v28, %v3859_v31  ;;  %v3271_v23 = vld [vmem:[%s6640_s13 + $0x94] sm:$0xf0]  ;;  %v3747_v17 = vld [vmem:[%s6640_s13 + $0x44c] sm:$0xf0]  ;;  %v4296_v31 = vld [vmem:[%s6640_s13 + $0x370] sm:$0xf0] }
 0x22f   :  { %2592 = vmatpush.bf16.msrb.mxu1 %v3494_v33  ;;  %v3662_v33 = vor.u32 %v4302_v20, %v3661_v19  ;;  %v3274_v45 = vor.u32 %v4201_v10, %v3271_v23  ;;  %v3389_v19 = vld [vmem:[%s6640_s13 + $0x160] sm:$0xf]  ;;  %v4233_v20 = vld [vmem:[%s6640_s13 + $0x178] sm:$0xf0]  ;;  %v3641_v28 = vld [vmem:[%s6640_s13 + $0x358] sm:$0xf] }
 0x230   :  { %2581 = vmatpush.bf16.msrb.mxu0 %v3214_v60  ;;  %v4365_v60 = vld [vmem:[%s6640_s13 + $0x598] sm:$0xf0]  ;;  %v3361_v10 = vld [vmem:[%s6640_s13 + $0x128] sm:$0xf]  ;;  %v4226_v23 = vld [vmem:[%s6640_s13 + $0x140] sm:$0xf0] }
 0x231   :  { %2603 = vmatpush.bf16.msrb.mxu2 %v3774_v57  ;;  %v4341_v57 = vld [vmem:[%s6640_s13 + $0x4dc] sm:$0xf]  ;;  %v3914_v39 = vor.u32 %v4365_v60, %v3913_v62  ;;  %v3719_v60 = vld [vmem:[%s6640_s13 + $0x414] sm:$0xf0]  ;;  %v4306_v30 = vld [vmem:[%s6640_s13 + $0x3c4] sm:$0xf] }
 0x232   :  { %2615 = vmatpush.bf16.msrb.mxu3 %v4026_v37  ;;  %v3834_v8 = vor.u32 %v4341_v57, %v3831_v36  ;;  %v4083_v37 = vld [vmem:[%s6640_s13 + $0x6ec] sm:$0xf0]  ;;  %v4313_v62 = vld [vmem:[%s6640_s13 + $0x3fc] sm:$0xf]  ;;  %v3613_v57 = vld [vmem:[%s6640_s13 + $0x320] sm:$0xf] }
 0x233   :  { %2593 = vmatpush.bf16.msrb.mxu1 %v3466_v44  ;;  %2582 = vmatmul.bf16.vlgmr.msrb.gmra.mxu0 %v5587_v0  ;;  %v3523_v44 = vld [vmem:[%s6640_s13 + $0x28c] sm:$0xf0]  ;;  %v4086_v53 = vor.u32 %v4404_v47, %v4083_v37  ;;  %v4289_v36 = vld [vmem:[%s6640_s13 + $0x338] sm:$0xf0]  ;;  %v3691_v46 = vld [vmem:[%s6640_s13 + $0x3dc] sm:$0xf0] }
 0x234   :  { %2626 = vmatpush.bf16.msra.mxu0 %v3414_v41  ;;  %2556 = vmatmul.bf16.vlgmr.msra.gmra.mxu2 %v5664_v58  ;;  %v3554_v41 = vor.u32 %v4271_v40, %v3551_v55  ;;  %v3390_v40 = vor.u32 %v4233_v20, %v3389_v19  ;;  %v4383_v55 = vld [vmem:[%s6640_s13 + $0x62c] sm:$0xf]  ;;  %v3614_v47 = vor.u32 %v4289_v36, %v3613_v57  ;;  %v3585_v49 = vld [vmem:[%s6640_s13 + $0x2e8] sm:$0xf]  ;;  %v4362_v2 = vld [vmem:[%s6640_s13 + $0x584] sm:$0xf] }
 0x235   :  { %2604 = vmatpush.bf16.msrb.mxu2 %v3746_v50  ;;  %v3526_v50 = vor.u32 %v4264_v42, %v3523_v44  ;;  %v4376_v42 = vld [vmem:[%s6640_s13 + $0x5f4] sm:$0xf]  ;;  %v3971_v44 = vld [vmem:[%s6640_s13 + $0x60c] sm:$0xf0]  ;;  %v4219_v37 = vld [vmem:[%s6640_s13 + $0x108] sm:$0xf0] }
 0x236   :  { %2616 = vmatpush.bf16.msrb.mxu3 %v3998_v59  ;;  %v3974_v48 = vor.u32 %v4376_v42, %v3971_v44  ;;  %v3915_v4 = vld [vmem:[%s6640_s13 + $0x59c] sm:$0xf0]  ;;  %v3887_v19 = vld [vmem:[%s6640_s13 + $0x564] sm:$0xf0]  ;;  %v3221_v57 = vld [vmem:[%s6640_s13 + $0x10] sm:$0xf] }
 0x237   :  { %2594 = vmatpush.bf16.msrb.mxu1 %v3438_v34  ;;  %v3495_v34 = vld [vmem:[%s6640_s13 + $0x254] sm:$0xf0]  ;;  %v4191_v36 = vld [vmem:[%s6640_s13 + $0x28] sm:$0xf0]  ;;  %v3781_v42 = vld [vmem:[%s6640_s13 + $0x470] sm:$0xf] }
 0x238   :  { %2627 = vmatpush.bf16.msra.mxu0 %v3386_v51  ;;  %v4334_v51 = vld [vmem:[%s6640_s13 + $0x4a4] sm:$0xf]  ;;  %v4331_v44 = vld [vmem:[%s6640_s13 + $0x488] sm:$0xf0] }
 0x239   :  { %2605 = vmatpush.bf16.msrb.mxu2 %v3718_v61  ;;  %2569 = vmatmul.bf16.vlgmr.msra.gmra.mxu3 %v5713_v29  ;;  %v3806_v59 = vor.u32 %v4334_v51, %v3803_v52  ;;  %v4327_v61 = vld [vmem:[%s6640_s13 + $0x46c] sm:$0xf]  ;;  %v3694_v51 = vor.u32 %v4306_v30, %v3691_v46  ;;  %v4369_v52 = vld [vmem:[%s6640_s13 + $0x5bc] sm:$0xf]  ;;  %v3419_v30 = vld [vmem:[%s6640_s13 + $0x1b4] sm:$0xf0] }
 0x23a   :  { %2595 = vmatmul.bf16.vlgmr.msrb.gmra.mxu1 %v5611_v21  ;;  %2617 = vmatpush.bf16.msrb.mxu3 %v3970_v11  ;;  %v3778_v11 = vor.u32 %v4327_v61, %v3775_v1  ;;  %v3557_v61 = vld [vmem:[%s6640_s13 + $0x2b0] sm:$0xf]  ;;  %v3473_v46 = vld [vmem:[%s6640_s13 + $0x208] sm:$0xf] }
 0x23b   :  { %2639 = vmatpush.bf16.msra.mxu1 %v3638_v35  ;;  %v4055_v35 = vld [vmem:[%s6640_s13 + $0x6b4] sm:$0xf0] }
 0x23c   :  { %2628 = vmatpush.bf16.msra.mxu0 %v3358_v63  ;;  %v3498_v63 = vor.u32 %v4257_v3, %v3495_v34  ;;  %v4058_v7 = vor.u32 %v4397_v56, %v4055_v35  ;;  %v4299_v34 = vld [vmem:[%s6640_s13 + $0x38c] sm:$0xf]  ;;  %v4212_v35 = vld [vmem:[%s6640_s13 + $0xd0] sm:$0xf0] }
 0x23d   :  { %2606 = vmatpush.bf16.msrb.mxu2 %v3690_v14  ;;  %v4027_v14 = vld [vmem:[%s6640_s13 + $0x67c] sm:$0xf0] }
 0x23e   :  { %2618 = vmatpush.bf16.msrb.mxu3 %v3942_v32 }
 0x23f   :  { %2640 = vmatpush.bf16.msra.mxu1 %v3610_v9  ;;  %v3218_v9 = vor.u32 %v4187_v38, %v3215_v27  ;;  %v4352_v38 = vld [vmem:[%s6640_s13 + $0x530] sm:$0xf0] }
 0x240   :  { %2629 = vmatpush.bf16.msra.mxu0 %v3330_v15  ;;  %v4320_v15 = vld [vmem:[%s6640_s13 + $0x434] sm:$0xf] }
 0x241   :  { %2607 = vmatpush.bf16.msrb.mxu2 %v3662_v33  ;;  %v3750_v32 = vor.u32 %v4320_v15, %v3747_v17  ;;  %v3999_v33 = vld [vmem:[%s6640_s13 + $0x644] sm:$0xf0]  ;;  %v3529_v15 = vld [vmem:[%s6640_s13 + $0x278] sm:$0xf]  ;;  %v4355_v17 = vld [vmem:[%s6640_s13 + $0x54c] sm:$0xf] }
 0x242   :  { %2619 = vmatpush.bf16.msrb.mxu3 %v3914_v39  ;;  %v3722_v39 = vor.u32 %v4313_v62, %v3719_v60  ;;  %v4261_v62 = vld [vmem:[%s6640_s13 + $0x258] sm:$0xf0] }
 0x243   :  { %2641 = vmatpush.bf16.msra.mxu1 %v3582_v26  ;;  %v4030_v26 = vor.u32 %v4390_v13, %v4027_v14  ;;  %v4345_v13 = vld [vmem:[%s6640_s13 + $0x4f8] sm:$0xf0]  ;;  %v3918_v14 = vor.u32 %v4362_v2, %v3915_v4  ;;  %v3725_v4 = vld [vmem:[%s6640_s13 + $0x400] sm:$0xf] }
 0x244   :  { %2630 = vmatpush.bf16.msra.mxu0 %v3302_v43  ;;  %2608 = vmatmul.bf16.vlgmr.msrb.gmra.mxu2 %v5664_v58  ;;  %v3442_v43 = vor.u32 %v4243_v22, %v3439_v24  ;;  %v4089_v24 = vld [vmem:[%s6640_s13 + $0x6d8] sm:$0xf] }
 0x245   :  { %2652 = vmatpush.bf16.msra.mxu2 %v3862_v25  ;;  %v3642_v25 = vor.u32 %v4296_v31, %v3641_v28  ;;  %v3249_v28 = vld [vmem:[%s6640_s13 + $0x48] sm:$0xf] }
 0x246   :  { %2620 = vmatpush.bf16.msrb.mxu3 %v3886_v18  ;;  %v3943_v18 = vld [vmem:[%s6640_s13 + $0x5d4] sm:$0xf0] }
 0x247   :  { %2642 = vmatpush.bf16.msra.mxu1 %v3554_v41  ;;  %v4002_v41 = vor.u32 %v4383_v55, %v3999_v33  ;;  %v3946_v27 = vor.u32 %v4369_v52, %v3943_v18  ;;  %v4338_v55 = vld [vmem:[%s6640_s13 + $0x4c0] sm:$0xf0]  ;;  %v3890_v33 = vor.u32 %v4355_v17, %v3887_v19  ;;  %v3753_v18 = vld [vmem:[%s6640_s13 + $0x438] sm:$0xf]  ;;  %v3697_v19 = vld [vmem:[%s6640_s13 + $0x3c8] sm:$0xf] }
 0x248   :  { %2631 = vmatpush.bf16.msra.mxu0 %v3274_v45  ;;  %v3362_v45 = vor.u32 %v4226_v23, %v3361_v10 }
 0x249   :  { %2653 = vmatpush.bf16.msra.mxu2 %v3834_v8  ;;  %2621 = vmatmul.bf16.vlgmr.msrb.gmra.mxu3 %v5713_v29  ;;  %v3333_v8 = vld [vmem:[%s6640_s13 + $0xf0] sm:$0xf] }
 0x24a   :  { %2665 = vmatpush.bf16.msra.mxu3 %v4086_v53  ;;  %v3334_v3 = vor.u32 %v4219_v37, %v3333_v8  ;;  %v3663_v53 = vld [vmem:[%s6640_s13 + $0x3a4] sm:$0xf0]  ;;  %v3222_v37 = vor.u32 %v4191_v36, %v3221_v57  ;;  %v3867_v57 = vld [vmem:[%s6640_s13 + $0x534] sm:$0xf0] }
 0x24b   :  { %2643 = vmatpush.bf16.msra.mxu1 %v3526_v50  ;;  %v4282_v50 = vld [vmem:[%s6640_s13 + $0x300] sm:$0xf0]  ;;  %v3666_v1 = vor.u32 %v4299_v34, %v3663_v53  ;;  %v3391_v53 = vld [vmem:[%s6640_s13 + $0x17c] sm:$0xf0] }
 0x24c   :  { %2632 = vmatpush.bf16.msra.mxu0 %v3246_v54  ;;  %v3305_v54 = vld [vmem:[%s6640_s13 + $0xb8] sm:$0xf]  ;;  %v3586_v56 = vor.u32 %v4282_v50, %v3585_v49  ;;  %v4033_v49 = vld [vmem:[%s6640_s13 + $0x668] sm:$0xf]  ;;  %v4394_v50 = vld [vmem:[%s6640_s13 + $0x680] sm:$0xf0] }
 0x24d   :  { %2654 = vmatpush.bf16.msra.mxu2 %v3806_v59  ;;  %v3865_v59 = vld [vmem:[%s6640_s13 + $0x518] sm:$0xf]  ;;  %v3306_v5 = vor.u32 %v4212_v35, %v3305_v54  ;;  %v4230_v34 = vld [vmem:[%s6640_s13 + $0x164] sm:$0xf]  ;;  %v3445_v54 = vld [vmem:[%s6640_s13 + $0x1d0] sm:$0xf]  ;;  %v4034_v35 = vor.u32 %v4394_v50, %v4033_v49 }
 0x24e   :  { %2666 = vmatpush.bf16.msra.mxu3 %v4058_v7  ;;  %v3866_v6 = vor.u32 %v4352_v38, %v3865_v59  ;;  %v3277_v7 = vld [vmem:[%s6640_s13 + $0x80] sm:$0xf]  ;;  %v4293_v59 = vld [vmem:[%s6640_s13 + $0x35c] sm:$0xf]  ;;  %v3643_v38 = vld [vmem:[%s6640_s13 + $0x374] sm:$0xf0] }
 0x24f   :  { %2644 = vmatpush.bf16.msra.mxu1 %v3498_v63  ;;  %v4275_v63 = vld [vmem:[%s6640_s13 + $0x2c8] sm:$0xf0]  ;;  %v4342_v49 = vld [vmem:[%s6640_s13 + $0x4e4] sm:$0xf]  ;;  %v3839_v50 = vld [vmem:[%s6640_s13 + $0x4fc] sm:$0xf0] }
 0x250   :  { %2633 = vmatpush.bf16.msra.mxu0 %v3218_v9  ;;  %v3558_v9 = vor.u32 %v4275_v63, %v3557_v61  ;;  %v4005_v61 = vld [vmem:[%s6640_s13 + $0x630] sm:$0xf]  ;;  %v4387_v63 = vld [vmem:[%s6640_s13 + $0x648] sm:$0xf0] }
 0x251   :  { %2655 = vmatpush.bf16.msra.mxu2 %v3778_v11  ;;  %v4205_v11 = vld [vmem:[%s6640_s13 + $0x98] sm:$0xf0] }
 0x252   :  { %2667 = vmatpush.bf16.msra.mxu3 %v4030_v26  ;;  %v3278_v20 = vor.u32 %v4205_v11, %v3277_v7  ;;  %v4408_v26 = vld [vmem:[%s6640_s13 + $0x6f0] sm:$0xf0]  ;;  %v4223_v7 = vld [vmem:[%s6640_s13 + $0x12c] sm:$0xf]  ;;  %v4006_v11 = vor.u32 %v4387_v63, %v4005_v61  ;;  %v3811_v63 = vld [vmem:[%s6640_s13 + $0x4c4] sm:$0xf0] }
 0x253   :  { %2645 = vmatpush.bf16.msra.mxu1 %v3470_v16  ;;  %2634 = vmatmul.bf16.vlgmr.msra.gmra.mxu0 %v5587_v0  ;;  %v4268_v16 = vld [vmem:[%s6640_s13 + $0x290] sm:$0xf0]  ;;  %v4090_v60 = vor.u32 %v4408_v26, %v4089_v24  ;;  %v3335_v26 = vld [vmem:[%s6640_s13 + $0x10c] sm:$0xf0]  ;;  %v4335_v61 = vld [vmem:[%s6640_s13 + $0x4ac] sm:$0xf] }
 0x254   :  { %2678 = vmatpush.bf16.msrb.mxu0 %v3418_v12  ;;  %v3837_v12 = vld [vmem:[%s6640_s13 + $0x4e0] sm:$0xf]  ;;  %v3530_v31 = vor.u32 %v4268_v16, %v3529_v15  ;;  %v3977_v15 = vld [vmem:[%s6640_s13 + $0x5f8] sm:$0xf]  ;;  %v4380_v16 = vld [vmem:[%s6640_s13 + $0x610] sm:$0xf0] }
 0x255   :  { %2656 = vmatpush.bf16.msra.mxu2 %v3750_v32  ;;  %v3838_v22 = vor.u32 %v4345_v13, %v3837_v12  ;;  %v4198_v32 = vld [vmem:[%s6640_s13 + $0x60] sm:$0xf0]  ;;  %v3615_v13 = vld [vmem:[%s6640_s13 + $0x33c] sm:$0xf0]  ;;  %v4216_v24 = vld [vmem:[%s6640_s13 + $0xf4] sm:$0xf] }
 0x256   :  { %2668 = vmatpush.bf16.msra.mxu3 %v4002_v41  ;;  %v3250_v10 = vor.u32 %v4198_v32, %v3249_v28  ;;  %v4401_v41 = vld [vmem:[%s6640_s13 + $0x6b8] sm:$0xf0]  ;;  %v4286_v12 = vld [vmem:[%s6640_s13 + $0x324] sm:$0xf]  ;;  %v3978_v28 = vor.u32 %v4380_v16, %v3977_v15  ;;  %v3587_v32 = vld [vmem:[%s6640_s13 + $0x304] sm:$0xf0] }
 0x257   :  { %2646 = vmatpush.bf16.msra.mxu1 %v3442_v43  ;;  %v3501_v43 = vld [vmem:[%s6640_s13 + $0x240] sm:$0xf]  ;;  %v4328_v15 = vld [vmem:[%s6640_s13 + $0x474] sm:$0xf]  ;;  %v3783_v16 = vld [vmem:[%s6640_s13 + $0x48c] sm:$0xf0] }
 0x258   :  { %2679 = vmatpush.bf16.msrb.mxu0 %v3390_v40  ;;  %v3809_v40 = vld [vmem:[%s6640_s13 + $0x4a8] sm:$0xf] }
 0x259   :  { %2657 = vmatpush.bf16.msra.mxu2 %v3722_v39  ;;  %v3810_v23 = vor.u32 %v4338_v55, %v3809_v40  ;;  %v3502_v39 = vor.u32 %v4261_v62, %v3501_v43  ;;  %v3949_v55 = vld [vmem:[%s6640_s13 + $0x5c0] sm:$0xf]  ;;  %v3338_v43 = vor.u32 %v4216_v24, %v3335_v26  ;;  %v3669_v62 = vld [vmem:[%s6640_s13 + $0x390] sm:$0xf] }
 0x25a   :  { %2647 = vmatmul.bf16.vlgmr.msra.gmra.mxu1 %v5611_v21  ;;  %2669 = vmatpush.bf16.msra.mxu3 %v3974_v48  ;;  %v3782_v48 = vor.u32 %v4331_v44, %v3781_v42  ;;  %v3559_v42 = vld [vmem:[%s6640_s13 + $0x2cc] sm:$0xf0] }
 0x25b   :  { %2691 = vmatpush.bf16.msrb.mxu1 %v3642_v25  ;;  %v4061_v25 = vld [vmem:[%s6640_s13 + $0x6a0] sm:$0xf] }
 0x25c   :  { %2680 = vmatpush.bf16.msrb.mxu0 %v3362_v45  ;;  %v4237_v45 = vld [vmem:[%s6640_s13 + $0x19c] sm:$0xf]  ;;  %v4062_v8 = vor.u32 %v4401_v41, %v4061_v25 }
 0x25d   :  { %2658 = vmatpush.bf16.msra.mxu2 %v3694_v51  ;;  %v3422_v51 = vor.u32 %v4237_v45, %v3419_v30  ;;  %v4209_v25 = vld [vmem:[%s6640_s13 + $0xbc] sm:$0xf]  ;;  %v3921_v45 = vld [vmem:[%s6640_s13 + $0x588] sm:$0xf]  ;;  %v4366_v30 = vld [vmem:[%s6640_s13 + $0x5a0] sm:$0xf0] }
 0x25e   :  { %2670 = vmatpush.bf16.msra.mxu3 %v3946_v27  ;;  %v4349_v41 = vld [vmem:[%s6640_s13 + $0x51c] sm:$0xf] }
 0x25f   :  { %2692 = vmatpush.bf16.msrb.mxu1 %v3614_v47  ;;  %v4254_v47 = vld [vmem:[%s6640_s13 + $0x220] sm:$0xf0] }
 0x260   :  { %2681 = vmatpush.bf16.msrb.mxu0 %v3334_v3  ;;  %v3474_v52 = vor.u32 %v4254_v47, %v3473_v46  ;;  %v4324_v3 = vld [vmem:[%s6640_s13 + $0x450] sm:$0xf0]  ;;  %v3870_v47 = vor.u32 %v4349_v41, %v3867_v57  ;;  %v3649_v41 = vld [vmem:[%s6640_s13 + $0x360] sm:$0xf]  ;;  %v4297_v57 = vld [vmem:[%s6640_s13 + $0x378] sm:$0xf0] }
 0x261   :  { %2659 = vmatpush.bf16.msra.mxu2 %v3666_v1  ;;  %v3754_v27 = vor.u32 %v4324_v3, %v3753_v18  ;;  %v3394_v1 = vor.u32 %v4230_v34, %v3391_v53  ;;  %v3531_v18 = vld [vmem:[%s6640_s13 + $0x294] sm:$0xf0]  ;;  %v3893_v3 = vld [vmem:[%s6640_s13 + $0x550] sm:$0xf]  ;;  %v4359_v34 = vld [vmem:[%s6640_s13 + $0x568] sm:$0xf0] }
 0x262   :  { %2671 = vmatpush.bf16.msra.mxu3 %v3918_v14 }
 0x263   :  { %2693 = vmatpush.bf16.msrb.mxu1 %v3586_v56  ;;  %v4247_v56 = vld [vmem:[%s6640_s13 + $0x1e8] sm:$0xf0] }
 0x264   :  { %2682 = vmatpush.bf16.msrb.mxu0 %v3306_v5  ;;  %2660 = vmatmul.bf16.vlgmr.msra.gmra.mxu2 %v5664_v58  ;;  %v3446_v2 = vor.u32 %v4247_v56, %v3445_v54  ;;  %v4317_v5 = vld [vmem:[%s6640_s13 + $0x418] sm:$0xf0]  ;;  %v3842_v54 = vor.u32 %v4342_v49, %v3839_v50  ;;  %v3621_v49 = vld [vmem:[%s6640_s13 + $0x328] sm:$0xf]  ;;  %v4290_v50 = vld [vmem:[%s6640_s13 + $0x340] sm:$0xf0] }
 0x265   :  { %2704 = vmatpush.bf16.msrb.mxu2 %v3866_v6  ;;  %v3646_v6 = vor.u32 %v4293_v59, %v3643_v38  ;;  %v3726_v14 = vor.u32 %v4317_v5, %v3725_v4  ;;  %v4405_v56 = vld [vmem:[%s6640_s13 + $0x6dc] sm:$0xf]  ;;  %v4195_v59 = vld [vmem:[%s6640_s13 + $0x4c] sm:$0xf]  ;;  %v3503_v4 = vld [vmem:[%s6640_s13 + $0x25c] sm:$0xf0] }
 0x266   :  { %2672 = vmatpush.bf16.msra.mxu3 %v3890_v33  ;;  %v4373_v33 = vld [vmem:[%s6640_s13 + $0x5d8] sm:$0xf0] }
 0x267   :  { %2694 = vmatpush.bf16.msrb.mxu1 %v3558_v9  ;;  %v3363_v9 = vld [vmem:[%s6640_s13 + $0x144] sm:$0xf0]  ;;  %v3950_v36 = vor.u32 %v4373_v33, %v3949_v55  ;;  %v4321_v33 = vld [vmem:[%s6640_s13 + $0x43c] sm:$0xf] }
 0x268   :  { %2683 = vmatpush.bf16.msrb.mxu0 %v3278_v20  ;;  %v3366_v17 = vor.u32 %v4223_v7, %v3363_v9  ;;  %v4310_v20 = vld [vmem:[%s6640_s13 + $0x3e0] sm:$0xf0]  ;;  %v3814_v9 = vor.u32 %v4335_v61, %v3811_v63  ;;  %v4283_v61 = vld [vmem:[%s6640_s13 + $0x308] sm:$0xf0] }
 0x269   :  { %2705 = vmatpush.bf16.msrb.mxu2 %v3838_v22  ;;  %2673 = vmatmul.bf16.vlgmr.msra.gmra.mxu3 %v5713_v29  ;;  %v3618_v22 = vor.u32 %v4286_v12, %v3615_v13  ;;  %v3698_v40 = vor.u32 %v4310_v20, %v3697_v19  ;;  %v4188_v12 = vld [vmem:[%s6640_s13 + $0x14] sm:$0xf]  ;;  %v3223_v13 = vld [vmem:[%s6640_s13 + $0x2c] sm:$0xf0]  ;;  %v4241_v19 = vld [vmem:[%s6640_s13 + $0x1b8] sm:$0xf0] }
 0x26a   :  { %2717 = vmatpush.bf16.msrb.mxu3 %v4090_v60  ;;  %v4303_v60 = vld [vmem:[%s6640_s13 + $0x3a8] sm:$0xf0]  ;;  %v3226_v26 = vor.u32 %v4188_v12, %v3223_v13  ;;  %v3873_v12 = vld [vmem:[%s6640_s13 + $0x520] sm:$0xf]  ;;  %v4353_v13 = vld [vmem:[%s6640_s13 + $0x538] sm:$0xf0] }
 0x26b   :  { %2695 = vmatpush.bf16.msrb.mxu1 %v3530_v31  ;;  %v4279_v31 = vld [vmem:[%s6640_s13 + $0x2ec] sm:$0xf]  ;;  %v3670_v44 = vor.u32 %v4303_v60, %v3669_v62  ;;  %v3397_v62 = vld [vmem:[%s6640_s13 + $0x168] sm:$0xf]  ;;  %v4234_v60 = vld [vmem:[%s6640_s13 + $0x180] sm:$0xf0] }
 0x26c   :  { %2684 = vmatpush.bf16.msrb.mxu0 %v3250_v10  ;;  %v3590_v10 = vor.u32 %v4279_v31, %v3587_v32  ;;  %v4251_v20 = vld [vmem:[%s6640_s13 + $0x20c] sm:$0xf]  ;;  %v4035_v32 = vld [vmem:[%s6640_s13 + $0x684] sm:$0xf0] }
 0x26d   :  { %2706 = vmatpush.bf16.msrb.mxu2 %v3810_v23  ;;  %v3307_v23 = vld [vmem:[%s6640_s13 + $0xd4] sm:$0xf0]  ;;  %v4391_v31 = vld [vmem:[%s6640_s13 + $0x66c] sm:$0xf] }
 0x26e   :  { %2718 = vmatpush.bf16.msrb.mxu3 %v4062_v8  ;;  %v3310_v46 = vor.u32 %v4209_v25, %v3307_v23  ;;  %v4202_v8 = vld [vmem:[%s6640_s13 + $0x84] sm:$0xf]  ;;  %v4244_v25 = vld [vmem:[%s6640_s13 + $0x1d4] sm:$0xf]  ;;  %v4038_v23 = vor.u32 %v4391_v31, %v4035_v32 }
 0x26f   :  { %2696 = vmatpush.bf16.msrb.mxu1 %v3502_v39  ;;  %v4272_v39 = vld [vmem:[%s6640_s13 + $0x2b4] sm:$0xf]  ;;  %v4206_v32 = vld [vmem:[%s6640_s13 + $0xa0] sm:$0xf0] }
 0x270   :  { %2685 = vmatpush.bf16.msrb.mxu0 %v3222_v37  ;;  %v3562_v37 = vor.u32 %v4272_v39, %v3559_v42  ;;  %v4384_v39 = vld [vmem:[%s6640_s13 + $0x634] sm:$0xf]  ;;  %v4007_v42 = vld [vmem:[%s6640_s13 + $0x64c] sm:$0xf0] }
 0x271   :  { %2707 = vmatpush.bf16.msrb.mxu2 %v3782_v48  ;;  %v3279_v48 = vld [vmem:[%s6640_s13 + $0x9c] sm:$0xf0] }
 0x272   :  { %2719 = vmatpush.bf16.msrb.mxu3 %v4034_v35  ;;  %v3282_v53 = vor.u32 %v4202_v8, %v3279_v48  ;;  %v4091_v35 = vld [vmem:[%s6640_s13 + $0x6f4] sm:$0xf0]  ;;  %v3369_v8 = vld [vmem:[%s6640_s13 + $0x130] sm:$0xf]  ;;  %v4010_v48 = vor.u32 %v4384_v39, %v4007_v42 }
 0x273   :  { %2697 = vmatpush.bf16.msrb.mxu1 %v3474_v52  ;;  %2686 = vmatmul.bf16.vlgmr.msrb.gmra.mxu0 %v5587_v0  ;;  %v4265_v52 = vld [vmem:[%s6640_s13 + $0x27c] sm:$0xf]  ;;  %v4094_v5 = vor.u32 %v4405_v56, %v4091_v35  ;;  %v3341_v56 = vld [vmem:[%s6640_s13 + $0xf8] sm:$0xf]  ;;  %v4220_v35 = vld [vmem:[%s6640_s13 + $0x110] sm:$0xf0] }
 0x274   :  { %2730 = vmatpush.bf16.msra.mxu0 %v3422_v51  ;;  %v3922_v51 = vor.u32 %v4366_v30, %v3921_v45  ;;  %v3534_v38 = vor.u32 %v4265_v52, %v3531_v18  ;;  %v4314_v30 = vld [vmem:[%s6640_s13 + $0x404] sm:$0xf]  ;;  %v4377_v52 = vld [vmem:[%s6640_s13 + $0x5fc] sm:$0xf]  ;;  %v3979_v18 = vld [vmem:[%s6640_s13 + $0x614] sm:$0xf0] }
 0x275   :  { %2708 = vmatpush.bf16.msrb.mxu2 %v3754_v27  ;;  %v3251_v27 = vld [vmem:[%s6640_s13 + $0x64] sm:$0xf0]  ;;  %v3257_v39 = vld [vmem:[%s6640_s13 + $0x50] sm:$0xf] }
 0x276   :  { %2720 = vmatpush.bf16.msrb.mxu3 %v4006_v11  ;;  %v3254_v7 = vor.u32 %v4195_v59, %v3251_v27  ;;  %v4063_v11 = vld [vmem:[%s6640_s13 + $0x6bc] sm:$0xf0]  ;;  %v3593_v27 = vld [vmem:[%s6640_s13 + $0x2f0] sm:$0xf] }
 0x277   :  { %2698 = vmatpush.bf16.msrb.mxu1 %v3446_v2  ;;  %v4258_v2 = vld [vmem:[%s6640_s13 + $0x244] sm:$0xf] }
 0x278   :  { %2731 = vmatpush.bf16.msra.mxu0 %v3394_v1  ;;  %v3894_v1 = vor.u32 %v4359_v34, %v3893_v3  ;;  %v4307_v34 = vld [vmem:[%s6640_s13 + $0x3cc] sm:$0xf] }
 0x279   :  { %2709 = vmatpush.bf16.msrb.mxu2 %v3726_v14  ;;  %v3506_v14 = vor.u32 %v4258_v2, %v3503_v4  ;;  %v3951_v2 = vld [vmem:[%s6640_s13 + $0x5dc] sm:$0xf0]  ;;  %v3342_v4 = vor.u32 %v4220_v35, %v3341_v56  ;;  %v3481_v35 = vld [vmem:[%s6640_s13 + $0x210] sm:$0xf] }
 0x27a   :  { %2699 = vmatmul.bf16.vlgmr.msrb.gmra.mxu1 %v5611_v21  ;;  %2721 = vmatpush.bf16.msrb.mxu3 %v3978_v28  ;;  %v3786_v28 = vor.u32 %v4328_v15, %v3783_v16  ;;  %v3565_v15 = vld [vmem:[%s6640_s13 + $0x2b8] sm:$0xf]  ;;  %v4276_v16 = vld [vmem:[%s6640_s13 + $0x2d0] sm:$0xf0] }
 0x27b   :  { %2743 = vmatpush.bf16.msra.mxu1 %v3646_v6  ;;  %v4398_v6 = vld [vmem:[%s6640_s13 + $0x6a4] sm:$0xf]  ;;  %v3566_v31 = vor.u32 %v4276_v16, %v3565_v15  ;;  %v4013_v15 = vld [vmem:[%s6640_s13 + $0x638] sm:$0xf]  ;;  %v4388_v16 = vld [vmem:[%s6640_s13 + $0x650] sm:$0xf0] }
 0x27c   :  { %2732 = vmatpush.bf16.msra.mxu0 %v3366_v17  ;;  %v3425_v17 = vld [vmem:[%s6640_s13 + $0x1a0] sm:$0xf]  ;;  %v4066_v24 = vor.u32 %v4398_v6, %v4063_v11  ;;  %v3671_v6 = vld [vmem:[%s6640_s13 + $0x3ac] sm:$0xf0]  ;;  %v4213_v11 = vld [vmem:[%s6640_s13 + $0xd8] sm:$0xf0] }
 0x27d   :  { %2710 = vmatpush.bf16.msrb.mxu2 %v3698_v40  ;;  %v3426_v40 = vor.u32 %v4241_v19, %v3425_v17  ;;  %v4363_v19 = vld [vmem:[%s6640_s13 + $0x58c] sm:$0xf] }
 0x27e   :  { %2722 = vmatpush.bf16.msrb.mxu3 %v3950_v36 }
 0x27f   :  { %2744 = vmatpush.bf16.msra.mxu1 %v3618_v22  ;;  %v3475_v22 = vld [vmem:[%s6640_s13 + $0x224] sm:$0xf0] }
 0x280   :  { %2733 = vmatpush.bf16.msra.mxu0 %v3338_v43  ;;  %v3478_v55 = vor.u32 %v4251_v20, %v3475_v22  ;;  %v3755_v43 = vld [vmem:[%s6640_s13 + $0x454] sm:$0xf0]  ;;  %v3923_v20 = vld [vmem:[%s6640_s13 + $0x5a4] sm:$0xf0] }
 0x281   :  { %2711 = vmatpush.bf16.msrb.mxu2 %v3670_v44  ;;  %v3758_v36 = vor.u32 %v4321_v33, %v3755_v43  ;;  %v3398_v44 = vor.u32 %v4234_v60, %v3397_v62  ;;  %v3926_v43 = vor.u32 %v4363_v19, %v3923_v20  ;;  %v3537_v62 = vld [vmem:[%s6640_s13 + $0x280] sm:$0xf]  ;;  %v4269_v60 = vld [vmem:[%s6640_s13 + $0x298] sm:$0xf0]  ;;  %v3733_v20 = vld [vmem:[%s6640_s13 + $0x408] sm:$0xf] }
 0x282   :  { %2723 = vmatpush.bf16.msrb.mxu3 %v3922_v51  ;;  %v3538_v42 = vor.u32 %v4269_v60, %v3537_v62 }
 0x283   :  { %2745 = vmatpush.bf16.msra.mxu1 %v3590_v10  ;;  %v3447_v10 = vld [vmem:[%s6640_s13 + $0x1ec] sm:$0xf0] }
 0x284   :  { %2734 = vmatpush.bf16.msra.mxu0 %v3310_v46  ;;  %2712 = vmatmul.bf16.vlgmr.msrb.gmra.mxu2 %v5664_v58  ;;  %v3450_v45 = vor.u32 %v4244_v25, %v3447_v10  ;;  %v3727_v46 = vld [vmem:[%s6640_s13 + $0x41c] sm:$0xf0]  ;;  %v4356_v25 = vld [vmem:[%s6640_s13 + $0x554] sm:$0xf]  ;;  %v3895_v10 = vld [vmem:[%s6640_s13 + $0x56c] sm:$0xf0] }
 0x285   :  { %2756 = vmatpush.bf16.msra.mxu2 %v3870_v47  ;;  %v3650_v47 = vor.u32 %v4297_v57, %v3649_v41  ;;  %v3730_v51 = vor.u32 %v4314_v30, %v3727_v46  ;;  %v4097_v57 = vld [vmem:[%s6640_s13 + $0x6e0] sm:$0xf]  ;;  %v4339_v30 = vld [vmem:[%s6640_s13 + $0x4c8] sm:$0xf0]  ;;  %v3898_v46 = vor.u32 %v4356_v25, %v3895_v10  ;;  %v3957_v10 = vld [vmem:[%s6640_s13 + $0x5c8] sm:$0xf] }
 0x286   :  { %2724 = vmatpush.bf16.msrb.mxu3 %v3894_v1  ;;  %v4370_v1 = vld [vmem:[%s6640_s13 + $0x5c4] sm:$0xf] }
 0x287   :  { %2746 = vmatpush.bf16.msra.mxu1 %v3562_v37  ;;  %v4227_v37 = vld [vmem:[%s6640_s13 + $0x148] sm:$0xf0] }
 0x288   :  { %2735 = vmatpush.bf16.msra.mxu0 %v3282_v53  ;;  %v3370_v3 = vor.u32 %v4227_v37, %v3369_v8  ;;  %v3699_v53 = vld [vmem:[%s6640_s13 + $0x3e4] sm:$0xf0]  ;;  %v4262_v8 = vld [vmem:[%s6640_s13 + $0x260] sm:$0xf0] }
 0x289   :  { %2757 = vmatpush.bf16.msra.mxu2 %v3842_v54  ;;  %2725 = vmatmul.bf16.vlgmr.msrb.gmra.mxu3 %v5713_v29  ;;  %v3622_v54 = vor.u32 %v4290_v50, %v3621_v49  ;;  %v3702_v63 = vor.u32 %v4307_v34, %v3699_v53  ;;  %v4069_v50 = vld [vmem:[%s6640_s13 + $0x6a8] sm:$0xf]  ;;  %v4192_v34 = vld [vmem:[%s6640_s13 + $0x30] sm:$0xf0]  ;;  %v3789_v53 = vld [vmem:[%s6640_s13 + $0x478] sm:$0xf] }
 0x28a   :  { %2769 = vmatpush.bf16.msra.mxu3 %v4094_v5  ;;  %v4300_v5 = vld [vmem:[%s6640_s13 + $0x394] sm:$0xf] }
 0x28b   :  { %2747 = vmatpush.bf16.msra.mxu1 %v3534_v38  ;;  %v3982_v38 = vor.u32 %v4377_v52, %v3979_v18  ;;  %v3674_v17 = vor.u32 %v4300_v5, %v3671_v6  ;;  %v3229_v52 = vld [vmem:[%s6640_s13 + $0x18] sm:$0xf]  ;;  %v3761_v6 = vld [vmem:[%s6640_s13 + $0x440] sm:$0xf] }
 0x28c   :  { %2736 = vmatpush.bf16.msra.mxu0 %v3254_v7  ;;  %v3313_v7 = vld [vmem:[%s6640_s13 + $0xc0] sm:$0xf] }
 0x28d   :  { %2758 = vmatpush.bf16.msra.mxu2 %v3814_v9  ;;  %v3594_v9 = vor.u32 %v4283_v61, %v3593_v27  ;;  %v3314_v22 = vor.u32 %v4213_v11, %v3313_v7  ;;  %v3230_v61 = vor.u32 %v4192_v34, %v3229_v52  ;;  %v4325_v7 = vld [vmem:[%s6640_s13 + $0x458] sm:$0xf0]  ;;  %v4248_v11 = vld [vmem:[%s6640_s13 + $0x1f0] sm:$0xf0] }
 0x28e   :  { %2770 = vmatpush.bf16.msra.mxu3 %v4066_v24  ;;  %v3874_v24 = vor.u32 %v4353_v13, %v3873_v12 }
 0x28f   :  { %2748 = vmatpush.bf16.msra.mxu1 %v3506_v14  ;;  %v3954_v14 = vor.u32 %v4370_v1, %v3951_v2  ;;  %v4041_v1 = vld [vmem:[%s6640_s13 + $0x670] sm:$0xf]  ;;  %v4395_v2 = vld [vmem:[%s6640_s13 + $0x688] sm:$0xf0] }
 0x290   :  { %2737 = vmatpush.bf16.msra.mxu0 %v3226_v26  ;;  %v6401_v59 = vpop.f32.mrf.mxu0  ;;  %v3285_v26 = vld [vmem:[%s6640_s13 + $0x88] sm:$0xf]  ;;  %v4042_v12 = vor.u32 %v4395_v2, %v4041_v1 }
 0x291   :  { %2759 = vmatpush.bf16.msra.mxu2 %v3786_v28 }
 0x292   :  { %2771 = vmatpush.bf16.msra.mxu3 %v4038_v23  ;;  %v3286_v23 = vor.u32 %v4206_v32, %v3285_v26 }
 0x293   :  { %2749 = vmatpush.bf16.msra.mxu1 %v3478_v55  ;;  %2738 = vmatmul.bf16.vlgmr.msra.gmra.mxu0 %v5587_v0  ;;  %v4346_v55 = vld [vmem:[%s6640_s13 + $0x500] sm:$0xf0] }
 0x294   :  { %2782 = vmatpush.bf16.msrb.mxu0 %v3426_v40  ;;  %v3845_v40 = vld [vmem:[%s6640_s13 + $0x4e8] sm:$0xf] }
 0x295   :  { %2760 = vmatpush.bf16.msra.mxu2 %v3758_v36  ;;  %v3846_v41 = vor.u32 %v4346_v55, %v3845_v40  ;;  %v4409_v36 = vld [vmem:[%s6640_s13 + $0x6f8] sm:$0xf0]  ;;  %v3985_v55 = vld [vmem:[%s6640_s13 + $0x600] sm:$0xf] }
 0x296   :  { %2772 = vmatpush.bf16.msra.mxu3 %v4010_v48  ;;  %v4098_v37 = vor.u32 %v4409_v36, %v4097_v57  ;;  %v4304_v36 = vld [vmem:[%s6640_s13 + $0x3b0] sm:$0xf0] }
 0x297   :  { %2750 = vmatpush.bf16.msra.mxu1 %v3450_v45  ;;  %v6449_v28 = vpop.f32.mrf.mxu1  ;;  %v3817_v45 = vld [vmem:[%s6640_s13 + $0x4b0] sm:$0xf] }
 0x298   :  { %2783 = vmatpush.bf16.msrb.mxu0 %v3398_v44  ;;  %v2481_v33 = vpop.f32.mrf.mxu0  ;;  %v4199_v44 = vld [vmem:[%s6640_s13 + $0x68] sm:$0xf0]  ;;  %v3818_v49 = vor.u32 %v4339_v30, %v3817_v45  ;;  %v3929_v30 = vld [vmem:[%s6640_s13 + $0x590] sm:$0xf] }
 0x299   :  { %2761 = vmatpush.bf16.msra.mxu2 %v3730_v51  ;;  %v3258_v48 = vor.u32 %v4199_v44, %v3257_v39  ;;  %v4402_v51 = vld [vmem:[%s6640_s13 + $0x6c0] sm:$0xf0]  ;;  %v4381_v33 = vld [vmem:[%s6640_s13 + $0x618] sm:$0xf0] }
 0x29a   :  { %2751 = vmatmul.bf16.vlgmr.msra.gmra.mxu1 %v5611_v21  ;;  %2773 = vmatpush.bf16.msra.mxu3 %v3982_v38  ;;  %v4255_v38 = vld [vmem:[%s6640_s13 + $0x228] sm:$0xf0]  ;;  %v4070_v27 = vor.u32 %v4402_v51, %v4069_v50  ;;  %v3986_v62 = vor.u32 %v4381_v33, %v3985_v55 }
 0x29b   :  { %2795 = vmatpush.bf16.msrb.mxu1 %v3650_v47  ;;  %v3509_v47 = vld [vmem:[%s6640_s13 + $0x248] sm:$0xf]  ;;  %v3482_v5 = vor.u32 %v4255_v38, %v3481_v35 }
 0x29c   :  { %2784 = vmatpush.bf16.msrb.mxu0 %v3370_v3  ;;  %v3510_v3 = vor.u32 %v4262_v8, %v3509_v47 }
 0x29d   :  { %2762 = vmatpush.bf16.msra.mxu2 %v3702_v63 }
 0x29e   :  { %2774 = vmatpush.bf16.msra.mxu3 %v3954_v14  ;;  %v3762_v14 = vor.u32 %v4325_v7, %v3761_v6 }
 0x29f   :  { %2796 = vmatpush.bf16.msrb.mxu1 %v3622_v54  ;;  %v2494_v18 = vpop.f32.mrf.mxu1  ;;  %v4332_v54 = vld [vmem:[%s6640_s13 + $0x490] sm:$0xf0] }
 0x2a0   :  { %2785 = vmatpush.bf16.msrb.mxu0 %v3342_v4  ;;  %v6515_v56 = vpop.f32.mrf.mxu0  ;;  %v3790_v63 = vor.u32 %v4332_v54, %v3789_v53  ;;  %v6532_v4 = vld [vmem:[%s6644_s14] sm:$0x7f] }
 0x2a1   :  { %2763 = vmatpush.bf16.msra.mxu2 %v3674_v17  ;;  %v1304_v13 = vperm.slane %v6532_v4, 0  ;;  %v1305_v8 = vperm.slane %v6532_v4, 1 }
 0x2a2   :  { %2775 = vmatpush.bf16.msra.mxu3 %v3926_v43  ;;  %v3705_v43 = vld [vmem:[%s6640_s13 + $0x3d0] sm:$0xf] }
 0x2a3   :  { %2797 = vmatpush.bf16.msrb.mxu1 %v3594_v9  ;;  %v3453_v9 = vld [vmem:[%s6640_s13 + $0x1d8] sm:$0xf]  ;;  %v2480_v32 = vadd.f32 %v6401_v59, %v1304_v13  ;;  %v2532_v34 = vadd.f32 %v6515_v56, %v1305_v8 }
 0x2a4   :  { %2786 = vmatpush.bf16.msrb.mxu0 %v3314_v22  ;;  %2764 = vmatmul.bf16.vlgmr.msra.gmra.mxu2 %v5664_v58  ;;  %v3454_v19 = vor.u32 %v4248_v11, %v3453_v9  ;;  %v4318_v22 = vld [vmem:[%s6640_s13 + $0x420] sm:$0xf0] }
 0x2a5   :  { %2808 = vmatpush.bf16.msrb.mxu2 %v3874_v24  ;;  %v3734_v40 = vor.u32 %v4318_v22, %v3733_v20  ;;  %v2493_v59 = vadd.f32 %v6449_v28, %v2480_v32  ;;  %v3677_v28 = vld [vmem:[%s6640_s13 + $0x398] sm:$0xf] }
 0x2a6   :  { %2776 = vmatpush.bf16.msra.mxu3 %v3898_v46  ;;  %v3678_v45 = vor.u32 %v4304_v36, %v3677_v28  ;;  %v4367_v46 = vld [vmem:[%s6640_s13 + $0x5a8] sm:$0xf0] }
 0x2a7   :  { %2798 = vmatpush.bf16.msrb.mxu1 %v3566_v31  ;;  %v2544_v17 = vpop.f32.mrf.mxu1  ;;  %v2505_v24 = vpop.f32.mrf.mxu2  ;;  %v4014_v31 = vor.u32 %v4388_v16, %v4013_v15  ;;  %v3930_v47 = vor.u32 %v4367_v46, %v3929_v30  ;;  %v1309_v30 = vperm.slane %v6532_v4, 5 }
 0x2a8   :  { %2787 = vmatpush.bf16.msrb.mxu0 %v3286_v23  ;;  %v2533_v26 = vpop.f32.mrf.mxu0  ;;  %v2506_v60 = vadd.f32 %v2505_v24, %v2493_v59  ;;  %v4374_v23 = vld [vmem:[%s6640_s13 + $0x5e0] sm:$0xf0]  ;;  %v2545_v53 = vadd.f32 %v2544_v17, %v2532_v34  ;;  %v1307_v17 = vperm.slane %v6532_v4, 3 }
 0x2a9   :  { %2809 = vmatpush.bf16.msrb.mxu2 %v3846_v41  ;;  %2777 = vmatmul.bf16.vlgmr.msra.gmra.mxu3 %v5713_v29  ;;  %v3958_v44 = vor.u32 %v4374_v23, %v3957_v10 }
 0x2aa   :  { %2821 = vmatpush.bf16.msrb.mxu3 %v4098_v37  ;;  %v3901_v37 = vld [vmem:[%s6640_s13 + $0x558] sm:$0xf] }
 0x2ab   :  { %2799 = vmatpush.bf16.msrb.mxu1 %v3538_v42 }
 0x2ac   :  { %2788 = vmatpush.bf16.msrb.mxu0 %v3258_v48  ;;  %v2518_v41 = vpop.f32.mrf.mxu3  ;;  %v4360_v48 = vld [vmem:[%s6640_s13 + $0x570] sm:$0xf0] }
 0x2ad   :  { %2810 = vmatpush.bf16.msrb.mxu2 %v3818_v49 }
 0x2ae   :  { %2822 = vmatpush.bf16.msrb.mxu3 %v4070_v27 }
 0x2af   :  { %2800 = vmatpush.bf16.msrb.mxu1 %v3510_v3  ;;  %v2546_v57 = vpop.f32.mrf.mxu1  ;;  %v2507_v39 = vpop.f32.mrf.mxu2  ;;  %v3902_v3 = vor.u32 %v4360_v48, %v3901_v37 }
 0x2b0   :  { %2789 = vmatpush.bf16.msrb.mxu0 %v3230_v61  ;;  %v2583_v42 = vpop.f32.mrf.mxu0 }
 0x2b1   :  { %2811 = vmatpush.bf16.msrb.mxu2 %v3790_v63  ;;  %v1306_v63 = vperm.slane %v6532_v4, 2 }
 0x2b2   :  { %2823 = vmatpush.bf16.msrb.mxu3 %v4042_v12 }
 0x2b3   :  { %2801 = vmatpush.bf16.msrb.mxu1 %v3482_v5  ;;  %2790 = vmatmul.bf16.vlgmr.msrb.gmra.mxu0 %v5587_v0  ;;  %v4311_v0 = vld [vmem:[%s6640_s13 + $0x3e8] sm:$0xf0] }
 0x2b4   :  { %v3706_v25 = vor.u32 %v4311_v0, %v3705_v43  ;;  %v2520_v49 = vpop.f32.mrf.mxu3 }
 0x2b5   :  { %2812 = vmatpush.bf16.msrb.mxu2 %v3762_v14 }
 0x2b6   :  { %2824 = vmatpush.bf16.msrb.mxu3 %v4014_v31 }
 0x2b7   :  { %2802 = vmatpush.bf16.msrb.mxu1 %v3454_v19  ;;  %v2557_v51 = vpop.f32.mrf.mxu2  ;;  %v2596_v52 = vpop.f32.mrf.mxu1 }
 0x2b8   :  { %v2585_v18 = vpop.f32.mrf.mxu0  ;;  %v2558_v54 = vadd.f32 %v2557_v51, %v2545_v53 }
 0x2b9   :  { %2813 = vmatpush.bf16.msrb.mxu2 %v3734_v40 }
 0x2ba   :  { %2803 = vmatmul.bf16.vlgmr.msrb.gmra.mxu1 %v5611_v21  ;;  %v2519_v21 = vadd.f32 %v2518_v41, %v2506_v60  ;;  %2825 = vmatpush.bf16.msrb.mxu3 %v3986_v62  ;;  %v1308_v62 = vperm.slane %v6532_v4, 4 }
 0x2bc   :  { %4426 = vtanh.f32 %v2519_v21  ;;  %v2570_v35 = vpop.f32.mrf.mxu3 }
 0x2bd   :  { %2814 = vmatpush.bf16.msrb.mxu2 %v3706_v25  ;;  %v2571_v38 = vadd.f32 %v2570_v35, %v2558_v54  ;;  %v1310_v54 = vperm.slane %v6532_v4, 6 }
 0x2be   :  { %2826 = vmatpush.bf16.msrb.mxu3 %v3958_v44 }
 0x2bf   :  { %v2559_v27 = vpop.f32.mrf.mxu2  ;;  %v2598_v61 = vpop.f32.mrf.mxu1  ;;  %4428 = vtanh.f32 %v2571_v38 }
 0x2c1   :  { %2815 = vmatpush.bf16.msrb.mxu2 %v3678_v45 }
 0x2c2   :  { %v4427_v50 = vpop.eup %4426  ;;  %2827 = vmatpush.bf16.msrb.mxu3 %v3930_v47 }
 0x2c3   :  { %2841 = vst [vmem:[%s6645_s15] sm:$0xff] %v4427_v50 }
 0x2c4   :  { %2816 = vmatmul.bf16.vlgmr.msrb.gmra.mxu2 %v5664_v58  ;;  %v2572_v1 = vpop.f32.mrf.mxu3  ;;  %v2584_v58 = vadd.f32 %v2583_v42, %v1306_v63 }
 0x2c5   :  { %v4429_v2 = vpop.eup %4428 }
 0x2c6   :  { %2828 = vmatpush.bf16.msrb.mxu3 %v3902_v3  ;;  %2842 = vst [vmem:[%s6645_s15 + $0x8] sm:$0xff] %v4429_v2  ;;  %v2597_v56 = vadd.f32 %v2596_v52, %v2584_v58 }
 0x2c7   :  { %v2609_v5 = vpop.f32.mrf.mxu2 }
 0x2c8   :  { %v2610_v6 = vadd.f32 %v2609_v5, %v2597_v56 }
 0x2c9   :  { %2829 = vmatmul.bf16.vlgmr.msrb.gmra.mxu3 %v5713_v29 }
 0x2cc   :  { %v2622_v9 = vpop.f32.mrf.mxu3 }
 0x2cd   :  { %v2623_v11 = vadd.f32 %v2622_v9, %v2610_v6 }
 0x2cf   :  { %v2611_v12 = vpop.f32.mrf.mxu2  ;;  %4430 = vtanh.f32 %v2623_v11 }
 0x2d0   :  { %v2635_v7 = vpop.f32.mrf.mxu0 }
 0x2d1   :  { %v2636_v20 = vadd.f32 %v2635_v7, %v1307_v17 }
 0x2d4   :  { %v2624_v14 = vpop.f32.mrf.mxu3 }
 0x2d5   :  { %v4431_v15 = vpop.eup %4430 }
 0x2d6   :  { %2843 = vst [vmem:[%s6645_s15 + $0x10] sm:$0xff] %v4431_v15 }
 0x2d7   :  { %v2648_v29 = vpop.f32.mrf.mxu1 }
 0x2d8   :  { %v2637_v13 = vpop.f32.mrf.mxu0  ;;  %v2649_v22 = vadd.f32 %v2648_v29, %v2636_v20 }
 0x2df   :  { %v2650_v16 = vpop.f32.mrf.mxu1 }
 0x2e7   :  { %v2661_v19 = vpop.f32.mrf.mxu2 }
 0x2e8   :  { %v2662_v24 = vadd.f32 %v2661_v19, %v2649_v22 }
 0x2ec   :  { %v2674_v26 = vpop.f32.mrf.mxu3 }
 0x2ed   :  { %v2675_v32 = vadd.f32 %v2674_v26, %v2662_v24 }
 0x2ef   :  { %v2663_v40 = vpop.f32.mrf.mxu2  ;;  %4432 = vtanh.f32 %v2675_v32 }
 0x2f0   :  { %v2687_v31 = vpop.f32.mrf.mxu0 }
 0x2f1   :  { %v2688_v25 = vadd.f32 %v2687_v31, %v1308_v62 }
 0x2f4   :  { %v2676_v33 = vpop.f32.mrf.mxu3 }
 0x2f5   :  { %v4433_v0 = vpop.eup %4432 }
 0x2f6   :  { %2844 = vst [vmem:[%s6645_s15 + $0x18] sm:$0xff] %v4433_v0 }
 0x2f7   :  { %v2700_v55 = vpop.f32.mrf.mxu1 }
 0x2f8   :  { %v2689_v43 = vpop.f32.mrf.mxu0  ;;  %v2701_v10 = vadd.f32 %v2700_v55, %v2688_v25 }
 0x2ff   :  { %v2702_v59 = vpop.f32.mrf.mxu1 }
 0x307   :  { %v2713_v60 = vpop.f32.mrf.mxu2 }
 0x308   :  { %v2714_v23 = vadd.f32 %v2713_v60, %v2701_v10 }
 0x30c   :  { %v2726_v41 = vpop.f32.mrf.mxu3 }
 0x30d   :  { %v2727_v28 = vadd.f32 %v2726_v41, %v2714_v23 }
 0x30f   :  { %v2715_v36 = vpop.f32.mrf.mxu2  ;;  %4434 = vtanh.f32 %v2727_v28 }
 0x310   :  { %v2739_v57 = vpop.f32.mrf.mxu0 }
 0x311   :  { %v2740_v47 = vadd.f32 %v2739_v57, %v1309_v30 }
 0x314   :  { %v2728_v39 = vpop.f32.mrf.mxu3 }
 0x315   :  { %v4435_v44 = vpop.eup %4434 }
 0x316   :  { %2845 = vst [vmem:[%s6645_s15 + $0x20] sm:$0xff] %v4435_v44 }
 0x317   :  { %v2752_v21 = vpop.f32.mrf.mxu1 }
 0x318   :  { %v2741_v42 = vpop.f32.mrf.mxu0  ;;  %v2753_v8 = vadd.f32 %v2752_v21, %v2740_v47 }
 0x31f   :  { %v2754_v45 = vpop.f32.mrf.mxu1 }
 0x327   :  { %v2765_v46 = vpop.f32.mrf.mxu2 }
 0x328   :  { %v2766_v37 = vadd.f32 %v2765_v46, %v2753_v8 }
 0x32c   :  { %v2778_v48 = vpop.f32.mrf.mxu3 }
 0x32d   :  { %v2779_v50 = vadd.f32 %v2778_v48, %v2766_v37 }
 0x32f   :  { %v2767_v51 = vpop.f32.mrf.mxu2  ;;  %4436 = vtanh.f32 %v2779_v50 }
 0x330   :  { %v2791_v49 = vpop.f32.mrf.mxu0 }
 0x331   :  { %v2792_v38 = vadd.f32 %v2791_v49, %v1310_v54 }
 0x334   :  { %v2780_v18 = vpop.f32.mrf.mxu3 }
 0x335   :  { %v4437_v34 = vpop.eup %4436 }
 0x336   :  { %2846 = vst [vmem:[%s6645_s15 + $0x28] sm:$0xff] %v4437_v34 }
 0x337   :  { %v2804_v52 = vpop.f32.mrf.mxu1 }
 0x338   :  { %v2793_v3 = vpop.f32.mrf.mxu0  ;;  %v2805_v27 = vadd.f32 %v2804_v52, %v2792_v38 }
 0x33f   :  { %v2806_v53 = vpop.f32.mrf.mxu1 }
 0x347   :  { %v2817_v35 = vpop.f32.mrf.mxu2 }
 0x348   :  { %v2818_v61 = vadd.f32 %v2817_v35, %v2805_v27 }
 0x34c   :  { %v2830_v63 = vpop.f32.mrf.mxu3 }
 0x34d   :  { %v2831_v1 = vadd.f32 %v2830_v63, %v2818_v61 }
 0x34f   :  { %v2819_v2 = vpop.f32.mrf.mxu2  ;;  %4438 = vtanh.f32 %v2831_v1 }
 0x354   :  { %v2832_v5 = vpop.f32.mrf.mxu3 }
 0x355   :  { %v4439_v58 = vpop.eup %4438 }
 0x356   :  { %2848 = vst.msk [vmem:[%s6645_s15 + $0x30] sm:$0xff] %vm2847_vm14, %v4439_v58 }

</bundles_post_ra>
